<compile_context>
chip_gen: v7x
topology: tpu7x:2x2x1
jax: 0.10.0
libtpu: 0.0.40
codegen_flags: <defaults>
</compile_context>

<pallas_src>
import functools

import jax
import jax.numpy as jnp
from jax import lax
from jax.experimental import pallas as pl
from jax.experimental.pallas import tpu as pltpu


# ----------------------------------------------------------------------------
# Fused Pallas kernel (per batch element):
#   conv3x3 + temb bias + SiLU + conv3x3 + bias, everything resident in VMEM.
# ----------------------------------------------------------------------------
def fused_unet_kernel(x_ref, xc_ref, w1_ref, temb_ref, w2t_ref, b2_ref, o_ref,
                      xpad_ref, hpad_ref, *, C, H, W):
    M = H * W
    c_hid = w1_ref.shape[-1]
    c_out = w2t_ref.shape[1]

    # Zero only the 1-pixel halo ring of the scratches ("same" zero padding).
    # Done every grid step so iterations stay fully independent.
    def zero_ring(ref):
        hp, wp, cc = ref.shape
        zrow = jnp.zeros((1, wp, cc), ref.dtype)
        zcol = jnp.zeros((hp, 1, cc), ref.dtype)
        ref[0:1, :, :] = zrow
        ref[hp - 1:hp, :, :] = zrow
        ref[:, 0:1, :] = zcol
        ref[:, wp - 1:wp, :] = zcol

    zero_ring(xpad_ref)
    zero_ring(hpad_ref)

    # torch.cat((x, x_c), dim=1) == channel concat; written into the halo
    # interior in place (in-kernel "im2col" source).
    xpad_ref[1:H + 1, 1:W + 1, :] = jnp.concatenate(
        [x_ref[0], xc_ref[0]], axis=-1)

    # ---- conv1: 9 accumulating per-tap matmuls (M, 2C) @ (2C, c_hid) --------
    h = jnp.zeros((M, c_hid), jnp.float32)
    for tap in range(9):
        dh, dw = divmod(tap, 3)
        slab = xpad_ref[dh:dh + H, dw:dw + W, :].reshape(M, 2 * C)
        h = h + jnp.dot(slab.astype(jnp.bfloat16), w1_ref[tap],
                        preferred_element_type=jnp.float32)

    # time-embedding bias (conv1 bias pre-folded by the wrapper) + SiLU in f32.
    h = h + temb_ref[0]
    h = h * jax.nn.sigmoid(h)

    # Hidden activation never leaves VMEM: write it into its halo interior.
    hpad_ref[1:H + 1, 1:W + 1, :] = h.reshape(H, W, c_hid)

    # ---- conv2, computed transposed:  out_t (c_out, M) += w2t_tap @ slab^T --
    # (contract the minor dims of both operands) so the final store is a
    # lane-dense NCHW slab.
    out_t = jnp.zeros((c_out, M), jnp.float32)
    for tap in range(9):
        dh, dw = divmod(tap, 3)
        slab = hpad_ref[dh:dh + H, dw:dw + W, :].reshape(M, c_hid)
        out_t = out_t + lax.dot_general(
            w2t_ref[tap], slab.astype(jnp.bfloat16),
            dimension_numbers=(((1,), (1,)), ((), ())),
            preferred_element_type=jnp.float32)

    o_ref[0] = (out_t + b2_ref[...]).astype(o_ref.dtype)


# ----------------------------------------------------------------------------
# Glue: time embedding, parameter init, CondModel forward.
# ----------------------------------------------------------------------------
def sinusoidal_embedding(t, dim):
    half = dim // 2
    freqs = jnp.exp(-jnp.log(10000.0) * jnp.arange(half, dtype=jnp.float32)
                    / (half - 1))
    args = t.astype(jnp.float32)[:, None] * freqs[None, :]
    return jnp.concatenate([jnp.sin(args), jnp.cos(args)], axis=-1)  # (B, dim)


def init_params(key, c_in, c_hidden, c_out, t_dim):
    ks = jax.random.split(key, 6)
    scale = 0.05
    # NOTE: w[tap] corresponds to torch_weight[:, :, tap//3, tap%3].T if real
    # PyTorch UNet weights were ever injected (zero "same" padding assumed).
    return {
        "w1": scale * jax.random.normal(ks[0], (9, c_in, c_hidden), jnp.float32),
        "b1": scale * jax.random.normal(ks[1], (1, c_hidden), jnp.float32),
        "w2": scale * jax.random.normal(ks[2], (9, c_hidden, c_out), jnp.float32),
        "b2": scale * jax.random.normal(ks[3], (c_out,), jnp.float32),
        "wt": scale * jax.random.normal(ks[4], (t_dim, c_hidden), jnp.float32),
        "bt": scale * jax.random.normal(ks[5], (c_hidden,), jnp.float32),
    }


def cond_model_forward(params, x, t, x_c, *, t_dim):
    """Equivalent of CondModel.forward: unet(cat((x, x_c), dim=1), t)."""
    B, C, H, W = x.shape
    c_hid = params["w1"].shape[-1]
    c_out = params["w2"].shape[-1]

    # Layout plumbing only (NCHW -> NHWC so the channel dim is the matmul K);
    # all patch building / zero padding happens inside the kernel in VMEM.
    x_nhwc = jnp.transpose(x, (0, 2, 3, 1))
    xc_nhwc = jnp.transpose(x_c, (0, 2, 3, 1))

    # tiny time-MLP glue: sinusoidal -> linear -> SiLU; conv1 bias folded in.
    emb = sinusoidal_embedding(t, t_dim)
    temb = emb @ params["wt"] + params["bt"]
    temb = temb * jax.nn.sigmoid(temb)
    temb1 = (temb + params["b1"]).reshape(B, 1, c_hid)           # (B, 1, c_hid)

    # Weights as bf16 MXU operands; conv2 weight pre-transposed per tap so the
    # kernel can emit the output NCHW-contiguous.
    w1b = params["w1"].astype(jnp.bfloat16)                                  # (9, 2C, c_hid)
    w2tb = jnp.transpose(params["w2"], (0, 2, 1)).astype(jnp.bfloat16)       # (9, c_out, c_hid)
    b2c = params["b2"].reshape(c_out, 1).astype(jnp.float32)                 # (c_out, 1)

    kern = functools.partial(fused_unet_kernel, C=C, H=H, W=W)
    out = pl.pallas_call(
        kern,
        out_shape=jax.ShapeDtypeStruct((B, c_out, H * W), jnp.float32),
        grid=(B,),
        in_specs=[
            pl.BlockSpec((1, H, W, C), lambda b: (b, 0, 0, 0)),          # x
            pl.BlockSpec((1, H, W, C), lambda b: (b, 0, 0, 0)),          # x_c
            pl.BlockSpec((9, 2 * C, c_hid), lambda b: (0, 0, 0)),        # w1 (resident)
            pl.BlockSpec((1, 1, c_hid), lambda b: (b, 0, 0)),            # temb (per batch)
            pl.BlockSpec((9, c_out, c_hid), lambda b: (0, 0, 0)),        # w2^T (resident)
            pl.BlockSpec((c_out, 1), lambda b: (0, 0)),                  # b2 (resident)
        ],
        out_specs=pl.BlockSpec((1, c_out, H * W), lambda b: (b, 0, 0)),
        scratch_shapes=[
            pltpu.VMEM((H + 2, W + 2, 2 * C), jnp.float32),   # conv1 input halo
            pltpu.VMEM((H + 2, W + 2, c_hid), jnp.float32),   # hidden halo
        ],
        compiler_params=pltpu.CompilerParams(
            dimension_semantics=("parallel",),        # shards batch across TCs (v7x)
            vmem_limit_bytes=32 * 1024 * 1024),       # explicit budget (<= v7x 64 MiB)
    )(x_nhwc, xc_nhwc, w1b, temb1, w2tb, b2c)

    # Output is already NCHW-contiguous (B, c_out, H*W); reshape is free.
    return out.reshape(B, c_out, H, W)


# TODO(synk): the real `unet` architecture is injected at construction time and
# is unknown; this script instantiates a minimal synthetic conv UNet with the
# same calling convention unet(cat(x, x_c), t).

if __name__ == "__main__":
    B, C, H, W = 2, 4, 16, 16
    C_HIDDEN, T_DIM = 32, 32

    key = jax.random.PRNGKey(0)
    kx, kc, kt, kp = jax.random.split(key, 4)
    x = jax.random.normal(kx, (B, C, H, W), jnp.float32)
    x_c = jax.random.normal(kc, (B, C, H, W), jnp.float32)
    t = jax.random.randint(kt, (B,), 0, 1000)

    params = init_params(kp, 2 * C, C_HIDDEN, C, T_DIM)

    fwd = jax.jit(functools.partial(cond_model_forward, t_dim=T_DIM))
    out = fwd(params, x, t, x_c)
    jax.block_until_ready(out)
    assert out.shape == (B, C, H, W), out.shape
    print("KERNEL_OK")
</pallas_src>

<mosaic_0001>
module attributes {stable_mosaic.version = 11 : i64} {
  func.func @fused_unet_kernel(%arg0: i32, %arg1: memref<1x16x16x4xf32, #tpu.memory_space<vmem>>, %arg2: memref<1x16x16x4xf32, #tpu.memory_space<vmem>>, %arg3: memref<9x8x32xbf16, #tpu.memory_space<vmem>>, %arg4: memref<1x1x32xf32, #tpu.memory_space<vmem>>, %arg5: memref<9x4x32xbf16, #tpu.memory_space<vmem>>, %arg6: memref<4x1xf32, #tpu.memory_space<vmem>>, %arg7: memref<1x4x256xf32, #tpu.memory_space<vmem>>, %arg8: memref<18x18x8xf32, #tpu.memory_space<vmem>>, %arg9: memref<18x18x32xf32, #tpu.memory_space<vmem>>) attributes {dimension_semantics = [#tpu.dimension_semantics<parallel>], iteration_bounds = array<i64: 2>, scalar_prefetch = 0 : i64, scratch_operands = 2 : i64, tpu.core_type = #tpu.core_type<tc>, window_params = [{transform_indices = @transform_0, window_bounds = array<i64: 1, 16, 16, 4>}, {transform_indices = @transform_1, window_bounds = array<i64: 1, 16, 16, 4>}, {pipeline_mode = #tpu.pipeline_mode<synchronous>, transform_indices = @transform_2, window_bounds = array<i64: 9, 8, 32>}, {transform_indices = @transform_3, window_bounds = array<i64: 1, 1, 32>}, {pipeline_mode = #tpu.pipeline_mode<synchronous>, transform_indices = @transform_4, window_bounds = array<i64: 9, 4, 32>}, {pipeline_mode = #tpu.pipeline_mode<synchronous>, transform_indices = @transform_5, window_bounds = array<i64: 4, 1>}, {transform_indices = @transform_6, window_bounds = array<i64: 1, 4, 256>}]} {
    %cst = arith.constant 0.000000e+00 : f32
    %0 = vector.broadcast %cst : f32 to vector<1x18x8xf32>
    %cst_0 = arith.constant 0.000000e+00 : f32
    %1 = vector.broadcast %cst_0 : f32 to vector<18x1x8xf32>
    %c0 = arith.constant 0 : index
    %c0_1 = arith.constant 0 : index
    %c0_2 = arith.constant 0 : index
    %2 = vector.load %arg8[%c0, %c0_1, %c0_2] : memref<18x18x8xf32, #tpu.memory_space<vmem>>, vector<1x18x8xf32>
    tpu.vector_store %arg8[%c0, %c0_1, %c0_2], %0 {strides = array<i32>} : memref<18x18x8xf32, #tpu.memory_space<vmem>>, vector<1x18x8xf32>,
    %c17 = arith.constant 17 : index
    %c0_3 = arith.constant 0 : index
    %c0_4 = arith.constant 0 : index
    %3 = vector.load %arg8[%c17, %c0_3, %c0_4] : memref<18x18x8xf32, #tpu.memory_space<vmem>>, vector<1x18x8xf32>
    tpu.vector_store %arg8[%c17, %c0_3, %c0_4], %0 {strides = array<i32>} : memref<18x18x8xf32, #tpu.memory_space<vmem>>, vector<1x18x8xf32>,
    %c0_5 = arith.constant 0 : index
    %c0_6 = arith.constant 0 : index
    %c0_7 = arith.constant 0 : index
    %4 = vector.load %arg8[%c0_5, %c0_6, %c0_7] : memref<18x18x8xf32, #tpu.memory_space<vmem>>, vector<18x1x8xf32>
    tpu.vector_store %arg8[%c0_5, %c0_6, %c0_7], %1 {strides = array<i32>} : memref<18x18x8xf32, #tpu.memory_space<vmem>>, vector<18x1x8xf32>,
    %c0_8 = arith.constant 0 : index
    %c17_9 = arith.constant 17 : index
    %c0_10 = arith.constant 0 : index
    %5 = vector.load %arg8[%c0_8, %c17_9, %c0_10] : memref<18x18x8xf32, #tpu.memory_space<vmem>>, vector<18x1x8xf32>
    tpu.vector_store %arg8[%c0_8, %c17_9, %c0_10], %1 {strides = array<i32>} : memref<18x18x8xf32, #tpu.memory_space<vmem>>, vector<18x1x8xf32>,
    %cst_11 = arith.constant 0.000000e+00 : f32
    %6 = vector.broadcast %cst_11 : f32 to vector<1x18x32xf32>
    %cst_12 = arith.constant 0.000000e+00 : f32
    %7 = vector.broadcast %cst_12 : f32 to vector<18x1x32xf32>
    %c0_13 = arith.constant 0 : index
    %c0_14 = arith.constant 0 : index
    %c0_15 = arith.constant 0 : index
    %8 = vector.load %arg9[%c0_13, %c0_14, %c0_15] : memref<18x18x32xf32, #tpu.memory_space<vmem>>, vector<1x18x32xf32>
    tpu.vector_store %arg9[%c0_13, %c0_14, %c0_15], %6 {strides = array<i32>} : memref<18x18x32xf32, #tpu.memory_space<vmem>>, vector<1x18x32xf32>,
    %c17_16 = arith.constant 17 : index
    %c0_17 = arith.constant 0 : index
    %c0_18 = arith.constant 0 : index
    %9 = vector.load %arg9[%c17_16, %c0_17, %c0_18] : memref<18x18x32xf32, #tpu.memory_space<vmem>>, vector<1x18x32xf32>
    tpu.vector_store %arg9[%c17_16, %c0_17, %c0_18], %6 {strides = array<i32>} : memref<18x18x32xf32, #tpu.memory_space<vmem>>, vector<1x18x32xf32>,
    %c0_19 = arith.constant 0 : index
    %c0_20 = arith.constant 0 : index
    %c0_21 = arith.constant 0 : index
    %10 = vector.load %arg9[%c0_19, %c0_20, %c0_21] : memref<18x18x32xf32, #tpu.memory_space<vmem>>, vector<18x1x32xf32>
    tpu.vector_store %arg9[%c0_19, %c0_20, %c0_21], %7 {strides = array<i32>} : memref<18x18x32xf32, #tpu.memory_space<vmem>>, vector<18x1x32xf32>,
    %c0_22 = arith.constant 0 : index
    %c17_23 = arith.constant 17 : index
    %c0_24 = arith.constant 0 : index
    %11 = vector.load %arg9[%c0_22, %c17_23, %c0_24] : memref<18x18x32xf32, #tpu.memory_space<vmem>>, vector<18x1x32xf32>
    tpu.vector_store %arg9[%c0_22, %c17_23, %c0_24], %7 {strides = array<i32>} : memref<18x18x32xf32, #tpu.memory_space<vmem>>, vector<18x1x32xf32>,
    %c0_25 = arith.constant 0 : index
    %c0_26 = arith.constant 0 : index
    %c0_27 = arith.constant 0 : index
    %c0_28 = arith.constant 0 : index
    %12 = vector.load %arg1[%c0_25, %c0_26, %c0_27, %c0_28] : memref<1x16x16x4xf32, #tpu.memory_space<vmem>>, vector<1x16x16x4xf32>
    %13 = vector.shape_cast %12 : vector<1x16x16x4xf32> to vector<16x16x4xf32>
    %c0_29 = arith.constant 0 : index
    %c0_30 = arith.constant 0 : index
    %c0_31 = arith.constant 0 : index
    %c0_32 = arith.constant 0 : index
    %14 = vector.load %arg2[%c0_29, %c0_30, %c0_31, %c0_32] : memref<1x16x16x4xf32, #tpu.memory_space<vmem>>, vector<1x16x16x4xf32>
    %15 = vector.shape_cast %14 : vector<1x16x16x4xf32> to vector<16x16x4xf32>
    %16 = tpu.concatenate %13, %15 in 2 : vector<16x16x4xf32>, vector<16x16x4xf32> -> vector<16x16x8xf32>
    %c1 = arith.constant 1 : index
    %c1_33 = arith.constant 1 : index
    %c0_34 = arith.constant 0 : index
    %17 = vector.load %arg8[%c1, %c1_33, %c0_34] : memref<18x18x8xf32, #tpu.memory_space<vmem>>, vector<16x16x8xf32>
    tpu.vector_store %arg8[%c1, %c1_33, %c0_34], %16 {strides = array<i32>} : memref<18x18x8xf32, #tpu.memory_space<vmem>>, vector<16x16x8xf32>,
    %cst_35 = arith.constant 0.000000e+00 : f32
    %18 = vector.broadcast %cst_35 : f32 to vector<256x32xf32>
    %c0_36 = arith.constant 0 : index
    %c0_37 = arith.constant 0 : index
    %c0_38 = arith.constant 0 : index
    %19 = vector.load %arg8[%c0_36, %c0_37, %c0_38] : memref<18x18x8xf32, #tpu.memory_space<vmem>>, vector<16x16x8xf32>
    %20 = vector.shape_cast %19 : vector<16x16x8xf32> to vector<256x8xf32>
    %21 = arith.truncf %20 : vector<256x8xf32> to vector<256x8xbf16>
    %c0_39 = arith.constant 0 : index
    %c0_40 = arith.constant 0 : index
    %c0_41 = arith.constant 0 : index
    %22 = vector.load %arg3[%c0_39, %c0_40, %c0_41] : memref<9x8x32xbf16, #tpu.memory_space<vmem>>, vector<1x8x32xbf16>
    %23 = vector.shape_cast %22 : vector<1x8x32xbf16> to vector<8x32xbf16>
    %cst_42 = arith.constant dense<0.000000e+00> : vector<256x32xf32>
    %24 = tpu.matmul %21, %23, %cst_42 {dimension_numbers = #tpu.dot_dimension_numbers<[1], [0], [0], [1], [0, 0, 1, 1], [], []>} : vector<256x8xbf16>, vector<8x32xbf16>, vector<256x32xf32> -> vector<256x32xf32>
    %25 = arith.addf %18, %24 : vector<256x32xf32>
    %c0_43 = arith.constant 0 : index
    %c1_44 = arith.constant 1 : index
    %c0_45 = arith.constant 0 : index
    %26 = vector.load %arg8[%c0_43, %c1_44, %c0_45] : memref<18x18x8xf32, #tpu.memory_space<vmem>>, vector<16x16x8xf32>
    %27 = vector.shape_cast %26 : vector<16x16x8xf32> to vector<256x8xf32>
    %28 = arith.truncf %27 : vector<256x8xf32> to vector<256x8xbf16>
    %c1_46 = arith.constant 1 : index
    %c0_47 = arith.constant 0 : index
    %c0_48 = arith.constant 0 : index
    %29 = vector.load %arg3[%c1_46, %c0_47, %c0_48] : memref<9x8x32xbf16, #tpu.memory_space<vmem>>, vector<1x8x32xbf16>
    %30 = vector.shape_cast %29 : vector<1x8x32xbf16> to vector<8x32xbf16>
    %cst_49 = arith.constant dense<0.000000e+00> : vector<256x32xf32>
    %31 = tpu.matmul %28, %30, %cst_49 {dimension_numbers = #tpu.dot_dimension_numbers<[1], [0], [0], [1], [0, 0, 1, 1], [], []>} : vector<256x8xbf16>, vector<8x32xbf16>, vector<256x32xf32> -> vector<256x32xf32>
    %32 = arith.addf %25, %31 : vector<256x32xf32>
    %c0_50 = arith.constant 0 : index
    %c2 = arith.constant 2 : index
    %c0_51 = arith.constant 0 : index
    %33 = vector.load %arg8[%c0_50, %c2, %c0_51] : memref<18x18x8xf32, #tpu.memory_space<vmem>>, vector<16x16x8xf32>
    %34 = vector.shape_cast %33 : vector<16x16x8xf32> to vector<256x8xf32>
    %35 = arith.truncf %34 : vector<256x8xf32> to vector<256x8xbf16>
    %c2_52 = arith.constant 2 : index
    %c0_53 = arith.constant 0 : index
    %c0_54 = arith.constant 0 : index
    %36 = vector.load %arg3[%c2_52, %c0_53, %c0_54] : memref<9x8x32xbf16, #tpu.memory_space<vmem>>, vector<1x8x32xbf16>
    %37 = vector.shape_cast %36 : vector<1x8x32xbf16> to vector<8x32xbf16>
    %cst_55 = arith.constant dense<0.000000e+00> : vector<256x32xf32>
    %38 = tpu.matmul %35, %37, %cst_55 {dimension_numbers = #tpu.dot_dimension_numbers<[1], [0], [0], [1], [0, 0, 1, 1], [], []>} : vector<256x8xbf16>, vector<8x32xbf16>, vector<256x32xf32> -> vector<256x32xf32>
    %39 = arith.addf %32, %38 : vector<256x32xf32>
    %c1_56 = arith.constant 1 : index
    %c0_57 = arith.constant 0 : index
    %c0_58 = arith.constant 0 : index
    %40 = vector.load %arg8[%c1_56, %c0_57, %c0_58] : memref<18x18x8xf32, #tpu.memory_space<vmem>>, vector<16x16x8xf32>
    %41 = vector.shape_cast %40 : vector<16x16x8xf32> to vector<256x8xf32>
    %42 = arith.truncf %41 : vector<256x8xf32> to vector<256x8xbf16>
    %c3 = arith.constant 3 : index
    %c0_59 = arith.constant 0 : index
    %c0_60 = arith.constant 0 : index
    %43 = vector.load %arg3[%c3, %c0_59, %c0_60] : memref<9x8x32xbf16, #tpu.memory_space<vmem>>, vector<1x8x32xbf16>
    %44 = vector.shape_cast %43 : vector<1x8x32xbf16> to vector<8x32xbf16>
    %cst_61 = arith.constant dense<0.000000e+00> : vector<256x32xf32>
    %45 = tpu.matmul %42, %44, %cst_61 {dimension_numbers = #tpu.dot_dimension_numbers<[1], [0], [0], [1], [0, 0, 1, 1], [], []>} : vector<256x8xbf16>, vector<8x32xbf16>, vector<256x32xf32> -> vector<256x32xf32>
    %46 = arith.addf %39, %45 : vector<256x32xf32>
    %c1_62 = arith.constant 1 : index
    %c1_63 = arith.constant 1 : index
    %c0_64 = arith.constant 0 : index
    %47 = vector.load %arg8[%c1_62, %c1_63, %c0_64] : memref<18x18x8xf32, #tpu.memory_space<vmem>>, vector<16x16x8xf32>
    %48 = vector.shape_cast %47 : vector<16x16x8xf32> to vector<256x8xf32>
    %49 = arith.truncf %48 : vector<256x8xf32> to vector<256x8xbf16>
    %c4 = arith.constant 4 : index
    %c0_65 = arith.constant 0 : index
    %c0_66 = arith.constant 0 : index
    %50 = vector.load %arg3[%c4, %c0_65, %c0_66] : memref<9x8x32xbf16, #tpu.memory_space<vmem>>, vector<1x8x32xbf16>
    %51 = vector.shape_cast %50 : vector<1x8x32xbf16> to vector<8x32xbf16>
    %cst_67 = arith.constant dense<0.000000e+00> : vector<256x32xf32>
    %52 = tpu.matmul %49, %51, %cst_67 {dimension_numbers = #tpu.dot_dimension_numbers<[1], [0], [0], [1], [0, 0, 1, 1], [], []>} : vector<256x8xbf16>, vector<8x32xbf16>, vector<256x32xf32> -> vector<256x32xf32>
    %53 = arith.addf %46, %52 : vector<256x32xf32>
    %c1_68 = arith.constant 1 : index
    %c2_69 = arith.constant 2 : index
    %c0_70 = arith.constant 0 : index
    %54 = vector.load %arg8[%c1_68, %c2_69, %c0_70] : memref<18x18x8xf32, #tpu.memory_space<vmem>>, vector<16x16x8xf32>
    %55 = vector.shape_cast %54 : vector<16x16x8xf32> to vector<256x8xf32>
    %56 = arith.truncf %55 : vector<256x8xf32> to vector<256x8xbf16>
    %c5 = arith.constant 5 : index
    %c0_71 = arith.constant 0 : index
    %c0_72 = arith.constant 0 : index
    %57 = vector.load %arg3[%c5, %c0_71, %c0_72] : memref<9x8x32xbf16, #tpu.memory_space<vmem>>, vector<1x8x32xbf16>
    %58 = vector.shape_cast %57 : vector<1x8x32xbf16> to vector<8x32xbf16>
    %cst_73 = arith.constant dense<0.000000e+00> : vector<256x32xf32>
    %59 = tpu.matmul %56, %58, %cst_73 {dimension_numbers = #tpu.dot_dimension_numbers<[1], [0], [0], [1], [0, 0, 1, 1], [], []>} : vector<256x8xbf16>, vector<8x32xbf16>, vector<256x32xf32> -> vector<256x32xf32>
    %60 = arith.addf %53, %59 : vector<256x32xf32>
    %c2_74 = arith.constant 2 : index
    %c0_75 = arith.constant 0 : index
    %c0_76 = arith.constant 0 : index
    %61 = vector.load %arg8[%c2_74, %c0_75, %c0_76] : memref<18x18x8xf32, #tpu.memory_space<vmem>>, vector<16x16x8xf32>
    %62 = vector.shape_cast %61 : vector<16x16x8xf32> to vector<256x8xf32>
    %63 = arith.truncf %62 : vector<256x8xf32> to vector<256x8xbf16>
    %c6 = arith.constant 6 : index
    %c0_77 = arith.constant 0 : index
    %c0_78 = arith.constant 0 : index
    %64 = vector.load %arg3[%c6, %c0_77, %c0_78] : memref<9x8x32xbf16, #tpu.memory_space<vmem>>, vector<1x8x32xbf16>
    %65 = vector.shape_cast %64 : vector<1x8x32xbf16> to vector<8x32xbf16>
    %cst_79 = arith.constant dense<0.000000e+00> : vector<256x32xf32>
    %66 = tpu.matmul %63, %65, %cst_79 {dimension_numbers = #tpu.dot_dimension_numbers<[1], [0], [0], [1], [0, 0, 1, 1], [], []>} : vector<256x8xbf16>, vector<8x32xbf16>, vector<256x32xf32> -> vector<256x32xf32>
    %67 = arith.addf %60, %66 : vector<256x32xf32>
    %c2_80 = arith.constant 2 : index
    %c1_81 = arith.constant 1 : index
    %c0_82 = arith.constant 0 : index
    %68 = vector.load %arg8[%c2_80, %c1_81, %c0_82] : memref<18x18x8xf32, #tpu.memory_space<vmem>>, vector<16x16x8xf32>
    %69 = vector.shape_cast %68 : vector<16x16x8xf32> to vector<256x8xf32>
    %70 = arith.truncf %69 : vector<256x8xf32> to vector<256x8xbf16>
    %c7 = arith.constant 7 : index
    %c0_83 = arith.constant 0 : index
    %c0_84 = arith.constant 0 : index
    %71 = vector.load %arg3[%c7, %c0_83, %c0_84] : memref<9x8x32xbf16, #tpu.memory_space<vmem>>, vector<1x8x32xbf16>
    %72 = vector.shape_cast %71 : vector<1x8x32xbf16> to vector<8x32xbf16>
    %cst_85 = arith.constant dense<0.000000e+00> : vector<256x32xf32>
    %73 = tpu.matmul %70, %72, %cst_85 {dimension_numbers = #tpu.dot_dimension_numbers<[1], [0], [0], [1], [0, 0, 1, 1], [], []>} : vector<256x8xbf16>, vector<8x32xbf16>, vector<256x32xf32> -> vector<256x32xf32>
    %74 = arith.addf %67, %73 : vector<256x32xf32>
    %c2_86 = arith.constant 2 : index
    %c2_87 = arith.constant 2 : index
    %c0_88 = arith.constant 0 : index
    %75 = vector.load %arg8[%c2_86, %c2_87, %c0_88] : memref<18x18x8xf32, #tpu.memory_space<vmem>>, vector<16x16x8xf32>
    %76 = vector.shape_cast %75 : vector<16x16x8xf32> to vector<256x8xf32>
    %77 = arith.truncf %76 : vector<256x8xf32> to vector<256x8xbf16>
    %c8 = arith.constant 8 : index
    %c0_89 = arith.constant 0 : index
    %c0_90 = arith.constant 0 : index
    %78 = vector.load %arg3[%c8, %c0_89, %c0_90] : memref<9x8x32xbf16, #tpu.memory_space<vmem>>, vector<1x8x32xbf16>
    %79 = vector.shape_cast %78 : vector<1x8x32xbf16> to vector<8x32xbf16>
    %cst_91 = arith.constant dense<0.000000e+00> : vector<256x32xf32>
    %80 = tpu.matmul %77, %79, %cst_91 {dimension_numbers = #tpu.dot_dimension_numbers<[1], [0], [0], [1], [0, 0, 1, 1], [], []>} : vector<256x8xbf16>, vector<8x32xbf16>, vector<256x32xf32> -> vector<256x32xf32>
    %81 = arith.addf %74, %80 : vector<256x32xf32>
    %c0_92 = arith.constant 0 : index
    %c0_93 = arith.constant 0 : index
    %c0_94 = arith.constant 0 : index
    %82 = vector.load %arg4[%c0_92, %c0_93, %c0_94] : memref<1x1x32xf32, #tpu.memory_space<vmem>>, vector<1x1x32xf32>
    %83 = vector.shape_cast %82 : vector<1x1x32xf32> to vector<1x32xf32>
    %84 = vector.broadcast %83 : vector<1x32xf32> to vector<256x32xf32>
    %85 = arith.addf %81, %84 : vector<256x32xf32>
    %86 = arith.negf %85 : vector<256x32xf32>
    %87 = math.exp %86 : vector<256x32xf32>
    %cst_95 = arith.constant 1.000000e+00 : f32
    %88 = vector.broadcast %cst_95 : f32 to vector<256x32xf32>
    %89 = arith.addf %88, %87 : vector<256x32xf32>
    %90 = arith.divf %88, %89 : vector<256x32xf32>
    %91 = arith.mulf %85, %90 : vector<256x32xf32>
    %92 = vector.shape_cast %91 : vector<256x32xf32> to vector<16x16x32xf32>
    %c1_96 = arith.constant 1 : index
    %c1_97 = arith.constant 1 : index
    %c0_98 = arith.constant 0 : index
    %93 = vector.load %arg9[%c1_96, %c1_97, %c0_98] : memref<18x18x32xf32, #tpu.memory_space<vmem>>, vector<16x16x32xf32>
    tpu.vector_store %arg9[%c1_96, %c1_97, %c0_98], %92 {strides = array<i32>} : memref<18x18x32xf32, #tpu.memory_space<vmem>>, vector<16x16x32xf32>,
    %cst_99 = arith.constant 0.000000e+00 : f32
    %94 = vector.broadcast %cst_99 : f32 to vector<4x256xf32>
    %c0_100 = arith.constant 0 : index
    %c0_101 = arith.constant 0 : index
    %c0_102 = arith.constant 0 : index
    %95 = vector.load %arg9[%c0_100, %c0_101, %c0_102] : memref<18x18x32xf32, #tpu.memory_space<vmem>>, vector<16x16x32xf32>
    %96 = vector.shape_cast %95 : vector<16x16x32xf32> to vector<256x32xf32>
    %c0_103 = arith.constant 0 : index
    %c0_104 = arith.constant 0 : index
    %c0_105 = arith.constant 0 : index
    %97 = vector.load %arg5[%c0_103, %c0_104, %c0_105] : memref<9x4x32xbf16, #tpu.memory_space<vmem>>, vector<1x4x32xbf16>
    %98 = vector.shape_cast %97 : vector<1x4x32xbf16> to vector<4x32xbf16>
    %99 = arith.truncf %96 : vector<256x32xf32> to vector<256x32xbf16>
    %cst_106 = arith.constant dense<0.000000e+00> : vector<4x256xf32>
    %100 = tpu.matmul %98, %99, %cst_106 {dimension_numbers = #tpu.dot_dimension_numbers<[1], [1], [0], [0], [0, 0, 1, 0], [], []>} : vector<4x32xbf16>, vector<256x32xbf16>, vector<4x256xf32> -> vector<4x256xf32>
    %101 = arith.addf %94, %100 : vector<4x256xf32>
    %c0_107 = arith.constant 0 : index
    %c1_108 = arith.constant 1 : index
    %c0_109 = arith.constant 0 : index
    %102 = vector.load %arg9[%c0_107, %c1_108, %c0_109] : memref<18x18x32xf32, #tpu.memory_space<vmem>>, vector<16x16x32xf32>
    %103 = vector.shape_cast %102 : vector<16x16x32xf32> to vector<256x32xf32>
    %c1_110 = arith.constant 1 : index
    %c0_111 = arith.constant 0 : index
    %c0_112 = arith.constant 0 : index
    %104 = vector.load %arg5[%c1_110, %c0_111, %c0_112] : memref<9x4x32xbf16, #tpu.memory_space<vmem>>, vector<1x4x32xbf16>
    %105 = vector.shape_cast %104 : vector<1x4x32xbf16> to vector<4x32xbf16>
    %106 = arith.truncf %103 : vector<256x32xf32> to vector<256x32xbf16>
    %cst_113 = arith.constant dense<0.000000e+00> : vector<4x256xf32>
    %107 = tpu.matmul %105, %106, %cst_113 {dimension_numbers = #tpu.dot_dimension_numbers<[1], [1], [0], [0], [0, 0, 1, 0], [], []>} : vector<4x32xbf16>, vector<256x32xbf16>, vector<4x256xf32> -> vector<4x256xf32>
    %108 = arith.addf %101, %107 : vector<4x256xf32>
    %c0_114 = arith.constant 0 : index
    %c2_115 = arith.constant 2 : index
    %c0_116 = arith.constant 0 : index
    %109 = vector.load %arg9[%c0_114, %c2_115, %c0_116] : memref<18x18x32xf32, #tpu.memory_space<vmem>>, vector<16x16x32xf32>
    %110 = vector.shape_cast %109 : vector<16x16x32xf32> to vector<256x32xf32>
    %c2_117 = arith.constant 2 : index
    %c0_118 = arith.constant 0 : index
    %c0_119 = arith.constant 0 : index
    %111 = vector.load %arg5[%c2_117, %c0_118, %c0_119] : memref<9x4x32xbf16, #tpu.memory_space<vmem>>, vector<1x4x32xbf16>
    %112 = vector.shape_cast %111 : vector<1x4x32xbf16> to vector<4x32xbf16>
    %113 = arith.truncf %110 : vector<256x32xf32> to vector<256x32xbf16>
    %cst_120 = arith.constant dense<0.000000e+00> : vector<4x256xf32>
    %114 = tpu.matmul %112, %113, %cst_120 {dimension_numbers = #tpu.dot_dimension_numbers<[1], [1], [0], [0], [0, 0, 1, 0], [], []>} : vector<4x32xbf16>, vector<256x32xbf16>, vector<4x256xf32> -> vector<4x256xf32>
    %115 = arith.addf %108, %114 : vector<4x256xf32>
    %c1_121 = arith.constant 1 : index
    %c0_122 = arith.constant 0 : index
    %c0_123 = arith.constant 0 : index
    %116 = vector.load %arg9[%c1_121, %c0_122, %c0_123] : memref<18x18x32xf32, #tpu.memory_space<vmem>>, vector<16x16x32xf32>
    %117 = vector.shape_cast %116 : vector<16x16x32xf32> to vector<256x32xf32>
    %c3_124 = arith.constant 3 : index
    %c0_125 = arith.constant 0 : index
    %c0_126 = arith.constant 0 : index
    %118 = vector.load %arg5[%c3_124, %c0_125, %c0_126] : memref<9x4x32xbf16, #tpu.memory_space<vmem>>, vector<1x4x32xbf16>
    %119 = vector.shape_cast %118 : vector<1x4x32xbf16> to vector<4x32xbf16>
    %120 = arith.truncf %117 : vector<256x32xf32> to vector<256x32xbf16>
    %cst_127 = arith.constant dense<0.000000e+00> : vector<4x256xf32>
    %121 = tpu.matmul %119, %120, %cst_127 {dimension_numbers = #tpu.dot_dimension_numbers<[1], [1], [0], [0], [0, 0, 1, 0], [], []>} : vector<4x32xbf16>, vector<256x32xbf16>, vector<4x256xf32> -> vector<4x256xf32>
    %122 = arith.addf %115, %121 : vector<4x256xf32>
    %c1_128 = arith.constant 1 : index
    %c1_129 = arith.constant 1 : index
    %c0_130 = arith.constant 0 : index
    %123 = vector.load %arg9[%c1_128, %c1_129, %c0_130] : memref<18x18x32xf32, #tpu.memory_space<vmem>>, vector<16x16x32xf32>
    %124 = vector.shape_cast %123 : vector<16x16x32xf32> to vector<256x32xf32>
    %c4_131 = arith.constant 4 : index
    %c0_132 = arith.constant 0 : index
    %c0_133 = arith.constant 0 : index
    %125 = vector.load %arg5[%c4_131, %c0_132, %c0_133] : memref<9x4x32xbf16, #tpu.memory_space<vmem>>, vector<1x4x32xbf16>
    %126 = vector.shape_cast %125 : vector<1x4x32xbf16> to vector<4x32xbf16>
    %127 = arith.truncf %124 : vector<256x32xf32> to vector<256x32xbf16>
    %cst_134 = arith.constant dense<0.000000e+00> : vector<4x256xf32>
    %128 = tpu.matmul %126, %127, %cst_134 {dimension_numbers = #tpu.dot_dimension_numbers<[1], [1], [0], [0], [0, 0, 1, 0], [], []>} : vector<4x32xbf16>, vector<256x32xbf16>, vector<4x256xf32> -> vector<4x256xf32>
    %129 = arith.addf %122, %128 : vector<4x256xf32>
    %c1_135 = arith.constant 1 : index
    %c2_136 = arith.constant 2 : index
    %c0_137 = arith.constant 0 : index
    %130 = vector.load %arg9[%c1_135, %c2_136, %c0_137] : memref<18x18x32xf32, #tpu.memory_space<vmem>>, vector<16x16x32xf32>
    %131 = vector.shape_cast %130 : vector<16x16x32xf32> to vector<256x32xf32>
    %c5_138 = arith.constant 5 : index
    %c0_139 = arith.constant 0 : index
    %c0_140 = arith.constant 0 : index
    %132 = vector.load %arg5[%c5_138, %c0_139, %c0_140] : memref<9x4x32xbf16, #tpu.memory_space<vmem>>, vector<1x4x32xbf16>
    %133 = vector.shape_cast %132 : vector<1x4x32xbf16> to vector<4x32xbf16>
    %134 = arith.truncf %131 : vector<256x32xf32> to vector<256x32xbf16>
    %cst_141 = arith.constant dense<0.000000e+00> : vector<4x256xf32>
    %135 = tpu.matmul %133, %134, %cst_141 {dimension_numbers = #tpu.dot_dimension_numbers<[1], [1], [0], [0], [0, 0, 1, 0], [], []>} : vector<4x32xbf16>, vector<256x32xbf16>, vector<4x256xf32> -> vector<4x256xf32>
    %136 = arith.addf %129, %135 : vector<4x256xf32>
    %c2_142 = arith.constant 2 : index
    %c0_143 = arith.constant 0 : index
    %c0_144 = arith.constant 0 : index
    %137 = vector.load %arg9[%c2_142, %c0_143, %c0_144] : memref<18x18x32xf32, #tpu.memory_space<vmem>>, vector<16x16x32xf32>
    %138 = vector.shape_cast %137 : vector<16x16x32xf32> to vector<256x32xf32>
    %c6_145 = arith.constant 6 : index
    %c0_146 = arith.constant 0 : index
    %c0_147 = arith.constant 0 : index
    %139 = vector.load %arg5[%c6_145, %c0_146, %c0_147] : memref<9x4x32xbf16, #tpu.memory_space<vmem>>, vector<1x4x32xbf16>
    %140 = vector.shape_cast %139 : vector<1x4x32xbf16> to vector<4x32xbf16>
    %141 = arith.truncf %138 : vector<256x32xf32> to vector<256x32xbf16>
    %cst_148 = arith.constant dense<0.000000e+00> : vector<4x256xf32>
    %142 = tpu.matmul %140, %141, %cst_148 {dimension_numbers = #tpu.dot_dimension_numbers<[1], [1], [0], [0], [0, 0, 1, 0], [], []>} : vector<4x32xbf16>, vector<256x32xbf16>, vector<4x256xf32> -> vector<4x256xf32>
    %143 = arith.addf %136, %142 : vector<4x256xf32>
    %c2_149 = arith.constant 2 : index
    %c1_150 = arith.constant 1 : index
    %c0_151 = arith.constant 0 : index
    %144 = vector.load %arg9[%c2_149, %c1_150, %c0_151] : memref<18x18x32xf32, #tpu.memory_space<vmem>>, vector<16x16x32xf32>
    %145 = vector.shape_cast %144 : vector<16x16x32xf32> to vector<256x32xf32>
    %c7_152 = arith.constant 7 : index
    %c0_153 = arith.constant 0 : index
    %c0_154 = arith.constant 0 : index
    %146 = vector.load %arg5[%c7_152, %c0_153, %c0_154] : memref<9x4x32xbf16, #tpu.memory_space<vmem>>, vector<1x4x32xbf16>
    %147 = vector.shape_cast %146 : vector<1x4x32xbf16> to vector<4x32xbf16>
    %148 = arith.truncf %145 : vector<256x32xf32> to vector<256x32xbf16>
    %cst_155 = arith.constant dense<0.000000e+00> : vector<4x256xf32>
    %149 = tpu.matmul %147, %148, %cst_155 {dimension_numbers = #tpu.dot_dimension_numbers<[1], [1], [0], [0], [0, 0, 1, 0], [], []>} : vector<4x32xbf16>, vector<256x32xbf16>, vector<4x256xf32> -> vector<4x256xf32>
    %150 = arith.addf %143, %149 : vector<4x256xf32>
    %c2_156 = arith.constant 2 : index
    %c2_157 = arith.constant 2 : index
    %c0_158 = arith.constant 0 : index
    %151 = vector.load %arg9[%c2_156, %c2_157, %c0_158] : memref<18x18x32xf32, #tpu.memory_space<vmem>>, vector<16x16x32xf32>
    %152 = vector.shape_cast %151 : vector<16x16x32xf32> to vector<256x32xf32>
    %c8_159 = arith.constant 8 : index
    %c0_160 = arith.constant 0 : index
    %c0_161 = arith.constant 0 : index
    %153 = vector.load %arg5[%c8_159, %c0_160, %c0_161] : memref<9x4x32xbf16, #tpu.memory_space<vmem>>, vector<1x4x32xbf16>
    %154 = vector.shape_cast %153 : vector<1x4x32xbf16> to vector<4x32xbf16>
    %155 = arith.truncf %152 : vector<256x32xf32> to vector<256x32xbf16>
    %cst_162 = arith.constant dense<0.000000e+00> : vector<4x256xf32>
    %156 = tpu.matmul %154, %155, %cst_162 {dimension_numbers = #tpu.dot_dimension_numbers<[1], [1], [0], [0], [0, 0, 1, 0], [], []>} : vector<4x32xbf16>, vector<256x32xbf16>, vector<4x256xf32> -> vector<4x256xf32>
    %157 = arith.addf %150, %156 : vector<4x256xf32>
    %c0_163 = arith.constant 0 : index
    %c0_164 = arith.constant 0 : index
    %158 = vector.load %arg6[%c0_163, %c0_164] : memref<4x1xf32, #tpu.memory_space<vmem>>, vector<4x1xf32>
    %159 = vector.broadcast %158 : vector<4x1xf32> to vector<4x256xf32>
    %160 = arith.addf %157, %159 : vector<4x256xf32>
    %c0_165 = arith.constant 0 : index
    %c0_166 = arith.constant 0 : index
    %c0_167 = arith.constant 0 : index
    %161 = vector.load %arg7[%c0_165, %c0_166, %c0_167] : memref<1x4x256xf32, #tpu.memory_space<vmem>>, vector<1x4x256xf32>
    %162 = vector.shape_cast %161 : vector<1x4x256xf32> to vector<4x256xf32>
    %163 = vector.shape_cast %160 : vector<4x256xf32> to vector<1x4x256xf32>
    tpu.vector_store %arg7[%c0_165, %c0_166, %c0_167], %163 {strides = array<i32>} : memref<1x4x256xf32, #tpu.memory_space<vmem>>, vector<1x4x256xf32>,
    return
  }
  func.func @transform_0(%arg0: i32) -> (i32, i32, i32, i32) {
    %c0_i32 = arith.constant 0 : i32
    %c0_i32_0 = arith.constant 0 : i32
    %c0_i32_1 = arith.constant 0 : i32
    %c0_i32_2 = arith.constant 0 : i32
    return %arg0, %c0_i32, %c0_i32_0, %c0_i32_1 : i32, i32, i32, i32
  }
  func.func @transform_1(%arg0: i32) -> (i32, i32, i32, i32) {
    %c0_i32 = arith.constant 0 : i32
    %c0_i32_0 = arith.constant 0 : i32
    %c0_i32_1 = arith.constant 0 : i32
    %c0_i32_2 = arith.constant 0 : i32
    return %arg0, %c0_i32, %c0_i32_0, %c0_i32_1 : i32, i32, i32, i32
  }
  func.func @transform_2(%arg0: i32) -> (i32, i32, i32) {
    %c0_i32 = arith.constant 0 : i32
    %c0_i32_0 = arith.constant 0 : i32
    %c0_i32_1 = arith.constant 0 : i32
    %c0_i32_2 = arith.constant 0 : i32
    return %c0_i32, %c0_i32_0, %c0_i32_1 : i32, i32, i32
  }
  func.func @transform_3(%arg0: i32) -> (i32, i32, i32) {
    %c0_i32 = arith.constant 0 : i32
    %c0_i32_0 = arith.constant 0 : i32
    %c0_i32_1 = arith.constant 0 : i32
    return %arg0, %c0_i32, %c0_i32_0 : i32, i32, i32
  }
  func.func @transform_4(%arg0: i32) -> (i32, i32, i32) {
    %c0_i32 = arith.constant 0 : i32
    %c0_i32_0 = arith.constant 0 : i32
    %c0_i32_1 = arith.constant 0 : i32
    %c0_i32_2 = arith.constant 0 : i32
    return %c0_i32, %c0_i32_0, %c0_i32_1 : i32, i32, i32
  }
  func.func @transform_5(%arg0: i32) -> (i32, i32) {
    %c0_i32 = arith.constant 0 : i32
    %c0_i32_0 = arith.constant 0 : i32
    %c0_i32_1 = arith.constant 0 : i32
    return %c0_i32, %c0_i32_0 : i32, i32
  }
  func.func @transform_6(%arg0: i32) -> (i32, i32, i32) {
    %c0_i32 = arith.constant 0 : i32
    %c0_i32_0 = arith.constant 0 : i32
    %c0_i32_1 = arith.constant 0 : i32
    return %arg0, %c0_i32, %c0_i32_0 : i32, i32, i32
  }
}

</mosaic_0001>

<bundles_post_ra>
// kernel: cond_model_forward.1
= control target key start
LH: loop header
LB: loop body
LE: loop exit
PB: predicated region body
PF: predicated region fallthrough
CT: control target
= control target key end

     0   :  { %s6259_s21 = smov 0   ;;  %s7637_s0 = inlined_call_operand.vmem [shape: f32[2,16,16,4], index: 0, kind: input, shape index: {}]   ;;  %s7638_s1 = inlined_call_operand.vmem [shape: f32[2,16,16,4], index: 1, kind: input, shape index: {}]   ;;  %s7639_s2 = inlined_call_operand.vmem [shape: bf16[9,8,32], index: 2, kind: input, shape index: {}]   ;;  %s7640_s3 = inlined_call_operand.vmem [shape: f32[2,1,32], index: 3, kind: input, shape index: {}]   ;;  %s7641_s4 = inlined_call_operand.vmem [shape: bf16[9,4,32], index: 4, kind: input, shape index: {}]   ;;  %s7642_s5 = inlined_call_operand.vmem [shape: f32[4,1], index: 5, kind: input, shape index: {}]   ;;  %s7643_s6 = inlined_call_operand.vmem [shape: f32[2,4,256], index: 6, kind: output, shape index: {}]  }
   0x1 LB: > { %s4897_s22 = sadd.s32 4294967295, %s6219_s21   ;;  %p4901_p0 = scmp.ge.s32.totalorder %s6219_s21, 1  ;;  %s6219_s21 = sphi %s6259_s21, %s16_s21  }
   0x2   : > { %p230_p1 = scmp.lt.s32.totalorder %s6219_s21, 3 }
   0x4   : > { %p231_p2 = pnand %p4901_p0, %p230_p1 }
   0x5   : > { %p268_p3 = scmp.lt.s32.totalorder (!%p231_p2), %s4897_s22, 1  ;;  %vm287_vm0 = vcmask (!%p231_p2), 64512   ;;  %v4908_v0 = vld [vmem:[%s7639_s2 + $0x4] sm:$0xf] (!%p231_p2)  ;;  %vm784_vm1 = vcmask (!%p231_p2), 1043456   ;;  %vm290_vm2 = vcmask (!%p231_p2), 58368  }
   0x6   : > { %234 = sbr.rel (%p231_p2) target bundleno = 1736 (0x6c8), region = 44  ;;  %vm296_vm3 = vcmask (!%p231_p2), 57344   ;;  %5992 = vmatprep.subr.msk.bf16.mxu0 (!%p231_p2), %vm784_vm1, %v4908_v0  ;;  %v786_v1 = vsel (!%p231_p2), %vm784_vm1, %v4908_v0, 0  ;;  %v6221_v2 = vmov (!%p231_p2), 0.0   ;;  %v6357_v3 = vld [vmem:[%s7639_s2] sm:$0xf] (!%p231_p2) }
   0x7   : > { %288 = vst.msk [vmem:[#allocation2] sm:$0xff] (!%p231_p2), %vm287_vm0, %v6221_v2  ;;  %289 = vst.msk [vmem:[#allocation2 + $0x8] sm:$0xff] (!%p231_p2), %vm287_vm0, %v6221_v2  ;;  %5431 = vmatpush3.bf16.msra.mxu0 (!%p231_p2), %v786_v1  ;;  %s6222_s7 = smov (!%p231_p2), 4   ;;  %vm571_vm4 = vcmask (!%p231_p2), 31744   ;;  %vm333_vm5 = vcmask (!%p231_p2), 261120   ;;  %vm342_vm6 = vcmask (!%p231_p2), 253952  }
   0x8   : > { %291 = vst.msk [vmem:[#allocation2 + $0x10] sm:$0x3] (!%p231_p2), %vm290_vm2, %v6221_v2  ;;  %295 = vst.msk [vmem:[#allocation2 + $0x1a8] sm:$0x3] (!%p231_p2), %vm290_vm2, %v6221_v2  ;;  %5993 = vmatprep.subr.msk.bf16.mxu0 (!%p231_p2), %vm784_vm1, %v6357_v3  ;;  %vm336_vm7 = vcmask (!%p231_p2), 254976  }
   0x9   : > { %293 = vst.msk [vmem:[#allocation2 + $0x198] sm:$0xff] (!%p231_p2), %vm287_vm0, %v6221_v2  ;;  %294 = vst.msk [vmem:[#allocation2 + $0x1a0] sm:$0xff] (!%p231_p2), %vm287_vm0, %v6221_v2 }
   0xa   : > { %298 = vst.msk [vmem:[#allocation2 + $0x18] sm:$0x1] (!%p231_p2), %vm296_vm3, %v6221_v2  ;;  %299 = vst.msk [vmem:[#allocation2 + $0x30] sm:$0x1] (!%p231_p2), %vm296_vm3, %v6221_v2 }
   0xb   : > { %300 = vst.msk [vmem:[#allocation2 + $0x48] sm:$0x1] (!%p231_p2), %vm296_vm3, %v6221_v2  ;;  %301 = vst.msk [vmem:[#allocation2 + $0x60] sm:$0x1] (!%p231_p2), %vm296_vm3, %v6221_v2 }
   0xc   : > { %302 = vst.msk [vmem:[#allocation2 + $0x78] sm:$0x1] (!%p231_p2), %vm296_vm3, %v6221_v2  ;;  %303 = vst.msk [vmem:[#allocation2 + $0x90] sm:$0x1] (!%p231_p2), %vm296_vm3, %v6221_v2 }
   0xd   : > { %s7645_s22 = smov (!%p268_p3, %s4897_s22), 1  ;;  %304 = vst.msk [vmem:[#allocation2 + $0xa8] sm:$0x1] %vm296_vm3, %v6221_v2  ;;  %305 = vst.msk [vmem:[#allocation2 + $0xc0] sm:$0x1] %vm296_vm3, %v6221_v2 }
   0xe   : > { %306 = vst.msk [vmem:[#allocation2 + $0xd8] sm:$0x1] %vm296_vm3, %v6221_v2  ;;  %307 = vst.msk [vmem:[#allocation2 + $0xf0] sm:$0x1] %vm296_vm3, %v6221_v2  ;;  %s5112_s27 = sshll.u32 %s7645_s22, 8  ;;  %v686_v10 = vld [vmem:[#allocation2 + $0x1] sm:$0xff]  ;;  %s280_s29 = scalar_lea.vmem %s7640_s3, %s7645_s22 }
   0xf   : > { %308 = vst.msk [vmem:[#allocation2 + $0x108] sm:$0x1] %vm296_vm3, %v6221_v2  ;;  %309 = vst.msk [vmem:[#allocation2 + $0x120] sm:$0x1] %vm296_vm3, %v6221_v2  ;;  %s6369_s30 = scalar_lea.vmem %s7638_s1, %s5112_s27  ;;  %v687_v11 = vld [vmem:[#allocation2 + $0x9] sm:$0xff]  ;;  %s6437_s10 = scalar_lea.vmem %s7637_s0, %s5112_s27 }
  0x10   : > { %310 = vst.msk [vmem:[#allocation2 + $0x138] sm:$0x1] %vm296_vm3, %v6221_v2  ;;  %311 = vst.msk [vmem:[#allocation2 + $0x150] sm:$0x1] %vm296_vm3, %v6221_v2  ;;  %v413_v4 = vld [vmem:[%s6369_s30 + $0x10] sm:$0xff]  ;;  %v411_v5 = vld [vmem:[%s6369_s30] sm:$0xff]  ;;  %v718_v14 = vpack.c.bf16 %v687_v11, %v686_v10 }
  0x11   : > { %312 = vst.msk [vmem:[#allocation2 + $0x168] sm:$0x1] %vm296_vm3, %v6221_v2  ;;  %313 = vst.msk [vmem:[#allocation2 + $0x180] sm:$0x1] %vm296_vm3, %v6221_v2  ;;  %479 = vrot.lane.b32.xlu1 %v413_v4, %s6222_s7  ;;  %475 = vrot.lane.b32.xlu0 %v411_v5, %s6222_s7  ;;  %v414_v6 = vld [vmem:[%s6369_s30 + $0x18] sm:$0xff]  ;;  %v412_v7 = vld [vmem:[%s6369_s30 + $0x8] sm:$0xff] }
  0x12   : > { %316 = vst.msk [vmem:[#allocation2 + $0x29] sm:$0x1] %vm296_vm3, %v6221_v2  ;;  %317 = vst.msk [vmem:[#allocation2 + $0x41] sm:$0x1] %vm296_vm3, %v6221_v2  ;;  %v416_v8 = vld [vmem:[%s6369_s30 + $0x28] sm:$0xff]  ;;  %v415_v9 = vld [vmem:[%s6369_s30 + $0x20] sm:$0xff]  ;;  %5432 = vmatprep.mubr.msk.bf16.mxu0 %vm287_vm0, %v718_v14 }
  0x13   : > { %318 = vst.msk [vmem:[#allocation2 + $0x59] sm:$0x1] %vm296_vm3, %v6221_v2  ;;  %319 = vst.msk [vmem:[#allocation2 + $0x71] sm:$0x1] %vm296_vm3, %v6221_v2  ;;  %v418_v12 = vld [vmem:[%s6369_s30 + $0x38] sm:$0xff]  ;;  %v417_v13 = vld [vmem:[%s6369_s30 + $0x30] sm:$0xff] }
  0x14   : > { %320 = vst.msk [vmem:[#allocation2 + $0x89] sm:$0x1] %vm296_vm3, %v6221_v2  ;;  %321 = vst.msk [vmem:[#allocation2 + $0xa1] sm:$0x1] %vm296_vm3, %v6221_v2  ;;  %v420_v15 = vld [vmem:[%s6369_s30 + $0x48] sm:$0xff]  ;;  %v419_v16 = vld [vmem:[%s6369_s30 + $0x40] sm:$0xff] }
  0x15   : > { %322 = vst.msk [vmem:[#allocation2 + $0xb9] sm:$0x1] %vm296_vm3, %v6221_v2  ;;  %323 = vst.msk [vmem:[#allocation2 + $0xd1] sm:$0x1] %vm296_vm3, %v6221_v2  ;;  %481 = vrot.lane.b32.xlu1 %v414_v6, %s6222_s7  ;;  %477 = vrot.lane.b32.xlu0 %v412_v7, %s6222_s7  ;;  %v422_v17 = vld [vmem:[%s6369_s30 + $0x58] sm:$0xff]  ;;  %v421_v18 = vld [vmem:[%s6369_s30 + $0x50] sm:$0xff] }
  0x16   : > { %324 = vst.msk [vmem:[#allocation2 + $0xe9] sm:$0x1] %vm296_vm3, %v6221_v2  ;;  %325 = vst.msk [vmem:[#allocation2 + $0x101] sm:$0x1] %vm296_vm3, %v6221_v2  ;;  %v424_v19 = vld [vmem:[%s6369_s30 + $0x68] sm:$0xff]  ;;  %v423_v20 = vld [vmem:[%s6369_s30 + $0x60] sm:$0xff] }
  0x17   : > { %326 = vst.msk [vmem:[#allocation2 + $0x119] sm:$0x1] %vm296_vm3, %v6221_v2  ;;  %327 = vst.msk [vmem:[#allocation2 + $0x131] sm:$0x1] %vm296_vm3, %v6221_v2  ;;  %v426_v21 = vld [vmem:[%s6369_s30 + $0x78] sm:$0xff]  ;;  %v425_v22 = vld [vmem:[%s6369_s30 + $0x70] sm:$0xff] }
  0x18   : > { %328 = vst.msk [vmem:[#allocation2 + $0x149] sm:$0x1] %vm296_vm3, %v6221_v2  ;;  %329 = vst.msk [vmem:[#allocation2 + $0x161] sm:$0x1] %vm296_vm3, %v6221_v2  ;;  %v428_v23 = vld [vmem:[%s6369_s30 + $0x88] sm:$0xff]  ;;  %v427_v24 = vld [vmem:[%s6369_s30 + $0x80] sm:$0xff] }
  0x19   : > { %330 = vst.msk [vmem:[#allocation2 + $0x179] sm:$0x1] %vm296_vm3, %v6221_v2  ;;  %331 = vst.msk [vmem:[#allocation2 + $0x191] sm:$0x1] %vm296_vm3, %v6221_v2  ;;  %485 = vrot.lane.b32.xlu1 %v416_v8, %s6222_s7  ;;  %483 = vrot.lane.b32.xlu0 %v415_v9, %s6222_s7  ;;  %v430_v25 = vld [vmem:[%s6369_s30 + $0x98] sm:$0xff]  ;;  %v429_v26 = vld [vmem:[%s6369_s30 + $0x90] sm:$0xff] }
  0x1a   : > { %297 = vst.msk [vmem:[#allocation2] sm:$0x1] %vm296_vm3, %v6221_v2  ;;  %315 = vst.msk [vmem:[#allocation2 + $0x11] sm:$0x1] %vm296_vm3, %v6221_v2  ;;  %v432_v27 = vld [vmem:[%s6369_s30 + $0xa8] sm:$0xff]  ;;  %v431_v28 = vld [vmem:[%s6369_s30 + $0xa0] sm:$0xff] }
  0x1b   : > { %332 = vst.msk [vmem:[#allocation2 + $0x1a9] sm:$0x1] %vm296_vm3, %v6221_v2  ;;  %314 = vst.msk [vmem:[#allocation2 + $0x198] sm:$0x1] %vm296_vm3, %v6221_v2  ;;  %v434_v29 = vld [vmem:[%s6369_s30 + $0xb8] sm:$0xff]  ;;  %v433_v30 = vld [vmem:[%s6369_s30 + $0xb0] sm:$0xff] }
  0x1c   : > { %v436_v31 = vld [vmem:[%s6369_s30 + $0xc8] sm:$0xff]  ;;  %v435_v32 = vld [vmem:[%s6369_s30 + $0xc0] sm:$0xff]  ;;  %v438_v33 = vld [vmem:[%s6369_s30 + $0xd8] sm:$0xff]  ;;  %v998_v6 = vsel %vm784_vm1, %v6357_v3, 0  ;;  %334 = vst.msk [vmem:[#allocation3] sm:$0xff] %vm333_vm5, %v6221_v2  ;;  %s5114_s28 = sshll.u32 %s7645_s22, 3 }
  0x1d   : > { %489 = vrot.lane.b32.xlu1 %v418_v12, %s6222_s7  ;;  %487 = vrot.lane.b32.xlu0 %v417_v13, %s6222_s7  ;;  %v437_v34 = vld [vmem:[%s6369_s30 + $0xd0] sm:$0xff]  ;;  %v440_v35 = vld [vmem:[%s6369_s30 + $0xe8] sm:$0xff]  ;;  %335 = vst.msk [vmem:[#allocation3 + $0x8] sm:$0xff] %vm333_vm5, %v6221_v2  ;;  %339 = vst.msk [vmem:[#allocation3 + $0x198] sm:$0xff] %vm333_vm5, %v6221_v2 }
  0x1e   : > { %v439_v36 = vld [vmem:[%s6369_s30 + $0xe0] sm:$0xff]  ;;  %v381_v37 = vld [vmem:[%s6437_s10 + $0x10] sm:$0xff]  ;;  %v382_v43 = vld [vmem:[%s6437_s10 + $0x18] sm:$0xff]  ;;  %340 = vst.msk [vmem:[#allocation3 + $0x1a0] sm:$0xff] %vm333_vm5, %v6221_v2 }
  0x1f   : > { %v379_v38 = vld [vmem:[%s6437_s10] sm:$0xff]  ;;  %v380_v44 = vld [vmem:[%s6437_s10 + $0x8] sm:$0xff]  ;;  %v442_v53 = vld [vmem:[%s6369_s30 + $0xf8] sm:$0xff]  ;;  %343 = vst.msk [vmem:[#allocation3] sm:$0x1] %vm342_vm6, %v6221_v2 }
  0x20   : > { %v384_v49 = vld [vmem:[%s6437_s10 + $0x28] sm:$0xff]  ;;  %v383_v50 = vld [vmem:[%s6437_s10 + $0x20] sm:$0xff]  ;;  %v441_v54 = vld [vmem:[%s6369_s30 + $0xf0] sm:$0xff]  ;;  %344 = vst.msk [vmem:[#allocation3 + $0x18] sm:$0x1] %vm342_vm6, %v6221_v2 }
  0x21   : > { %493 = vrot.lane.b32.xlu1 %v420_v15, %s6222_s7  ;;  %491 = vrot.lane.b32.xlu0 %v419_v16, %s6222_s7  ;;  %v386_v57 = vld [vmem:[%s6437_s10 + $0x38] sm:$0xff]  ;;  %v385_v58 = vld [vmem:[%s6437_s10 + $0x30] sm:$0xff]  ;;  %345 = vst.msk [vmem:[#allocation3 + $0x30] sm:$0x1] %vm342_vm6, %v6221_v2  ;;  %346 = vst.msk [vmem:[#allocation3 + $0x48] sm:$0x1] %vm342_vm6, %v6221_v2 }
  0x22   : > { %v388_v8 = vld [vmem:[%s6437_s10 + $0x48] sm:$0xff]  ;;  %v387_v9 = vld [vmem:[%s6437_s10 + $0x40] sm:$0xff]  ;;  %v390_v16 = vld [vmem:[%s6437_s10 + $0x58] sm:$0xff]  ;;  %347 = vst.msk [vmem:[#allocation3 + $0x60] sm:$0x1] %vm342_vm6, %v6221_v2 }
  0x23   : > { %v6478_v10 = vld [vmem:[%s7639_s2 + $0x8] sm:$0xf]  ;;  %348 = vst.msk [vmem:[#allocation3 + $0x78] sm:$0x1] %vm342_vm6, %v6221_v2  ;;  %349 = vst.msk [vmem:[#allocation3 + $0x90] sm:$0x1] %vm342_vm6, %v6221_v2 }
  0x24   : > { %350 = vst.msk [vmem:[#allocation3 + $0xa8] sm:$0x1] %vm342_vm6, %v6221_v2  ;;  %351 = vst.msk [vmem:[#allocation3 + $0xc0] sm:$0x1] %vm342_vm6, %v6221_v2 }
  0x25   : > { %497 = vrot.lane.b32.xlu1 %v422_v17, %s6222_s7  ;;  %495 = vrot.lane.b32.xlu0 %v421_v18, %s6222_s7  ;;  %v389_v17 = vld [vmem:[%s6437_s10 + $0x50] sm:$0xff]  ;;  %352 = vst.msk [vmem:[#allocation3 + $0xd8] sm:$0x1] %vm342_vm6, %v6221_v2  ;;  %353 = vst.msk [vmem:[#allocation3 + $0xf0] sm:$0x1] %vm342_vm6, %v6221_v2 }
  0x26   : > { %354 = vst.msk [vmem:[#allocation3 + $0x108] sm:$0x1] %vm342_vm6, %v6221_v2  ;;  %355 = vst.msk [vmem:[#allocation3 + $0x120] sm:$0x1] %vm342_vm6, %v6221_v2 }
  0x27   : > { %356 = vst.msk [vmem:[#allocation3 + $0x138] sm:$0x1] %vm342_vm6, %v6221_v2  ;;  %357 = vst.msk [vmem:[#allocation3 + $0x150] sm:$0x1] %vm342_vm6, %v6221_v2 }
  0x28   : > { %358 = vst.msk [vmem:[#allocation3 + $0x168] sm:$0x1] %vm342_vm6, %v6221_v2  ;;  %359 = vst.msk [vmem:[#allocation3 + $0x180] sm:$0x1] %vm342_vm6, %v6221_v2 }
  0x29   : > { %501 = vrot.lane.b32.xlu1 %v424_v19, %s6222_s7  ;;  %499 = vrot.lane.b32.xlu0 %v423_v20, %s6222_s7  ;;  %360 = vst.msk [vmem:[#allocation3 + $0x198] sm:$0x1] %vm342_vm6, %v6221_v2  ;;  %362 = vst.msk [vmem:[#allocation3 + $0x29] sm:$0x1] %vm342_vm6, %v6221_v2 }
  0x2a   : > { %363 = vst.msk [vmem:[#allocation3 + $0x41] sm:$0x1] %vm342_vm6, %v6221_v2  ;;  %364 = vst.msk [vmem:[#allocation3 + $0x59] sm:$0x1] %vm342_vm6, %v6221_v2 }
  0x2b   : > { %365 = vst.msk [vmem:[#allocation3 + $0x71] sm:$0x1] %vm342_vm6, %v6221_v2  ;;  %366 = vst.msk [vmem:[#allocation3 + $0x89] sm:$0x1] %vm342_vm6, %v6221_v2 }
  0x2c   : > { %367 = vst.msk [vmem:[#allocation3 + $0xa1] sm:$0x1] %vm342_vm6, %v6221_v2  ;;  %368 = vst.msk [vmem:[#allocation3 + $0xb9] sm:$0x1] %vm342_vm6, %v6221_v2 }
  0x2d   : > { %505 = vrot.lane.b32.xlu1 %v426_v21, %s6222_s7  ;;  %503 = vrot.lane.b32.xlu0 %v425_v22, %s6222_s7  ;;  %369 = vst.msk [vmem:[#allocation3 + $0xd1] sm:$0x1] %vm342_vm6, %v6221_v2  ;;  %370 = vst.msk [vmem:[#allocation3 + $0xe9] sm:$0x1] %vm342_vm6, %v6221_v2 }
  0x2e   : > { %371 = vst.msk [vmem:[#allocation3 + $0x101] sm:$0x1] %vm342_vm6, %v6221_v2  ;;  %372 = vst.msk [vmem:[#allocation3 + $0x119] sm:$0x1] %vm342_vm6, %v6221_v2 }
  0x2f   : > { %373 = vst.msk [vmem:[#allocation3 + $0x131] sm:$0x1] %vm342_vm6, %v6221_v2  ;;  %374 = vst.msk [vmem:[#allocation3 + $0x149] sm:$0x1] %vm342_vm6, %v6221_v2 }
  0x30   : > { %375 = vst.msk [vmem:[#allocation3 + $0x161] sm:$0x1] %vm342_vm6, %v6221_v2  ;;  %376 = vst.msk [vmem:[#allocation3 + $0x179] sm:$0x1] %vm342_vm6, %v6221_v2 }
  0x31   : > { %509 = vrot.lane.b32.xlu1 %v428_v23, %s6222_s7  ;;  %507 = vrot.lane.b32.xlu0 %v427_v24, %s6222_s7  ;;  %377 = vst.msk [vmem:[#allocation3 + $0x191] sm:$0x1] %vm342_vm6, %v6221_v2 }
  0x32   : > { %337 = vst.msk [vmem:[#allocation3 + $0x10] sm:$0x3] %vm336_vm7, %v6221_v2  ;;  %341 = vst.msk [vmem:[#allocation3 + $0x1a8] sm:$0x3] %vm336_vm7, %v6221_v2 }
  0x33   : > { %361 = vst.msk [vmem:[#allocation3 + $0x11] sm:$0x1] %vm342_vm6, %v6221_v2  ;;  %378 = vst.msk [vmem:[#allocation3 + $0x1a9] sm:$0x1] %vm342_vm6, %v6221_v2 }
  0x35   : > { %513 = vrot.lane.b32.xlu1 %v430_v25, %s6222_s7  ;;  %511 = vrot.lane.b32.xlu0 %v429_v26, %s6222_s7  ;;  %v392_v25 = vld [vmem:[%s6437_s10 + $0x68] sm:$0xff]  ;;  %v391_v26 = vld [vmem:[%s6437_s10 + $0x60] sm:$0xff] }
  0x39   : > { %517 = vrot.lane.b32.xlu1 %v432_v27, %s6222_s7  ;;  %515 = vrot.lane.b32.xlu0 %v431_v28, %s6222_s7 }
  0x3d   : > { %521 = vrot.lane.b32.xlu1 %v434_v29, %s6222_s7  ;;  %519 = vrot.lane.b32.xlu0 %v433_v30, %s6222_s7 }
  0x41   : > { %525 = vrot.lane.b32.xlu1 %v436_v31, %s6222_s7  ;;  %523 = vrot.lane.b32.xlu0 %v435_v32, %s6222_s7 }
  0x45   : > { %529 = vrot.lane.b32.xlu1 %v438_v33, %s6222_s7  ;;  %527 = vrot.lane.b32.xlu0 %v437_v34, %s6222_s7  ;;  %v394_v34 = vld [vmem:[%s6437_s10 + $0x78] sm:$0xff] }
  0x49   : > { %533 = vrot.lane.b32.xlu1 %v440_v35, %s6222_s7  ;;  %531 = vrot.lane.b32.xlu0 %v439_v36, %s6222_s7  ;;  %v393_v35 = vld [vmem:[%s6437_s10 + $0x70] sm:$0xff] }
  0x4d   : > { %537 = vrot.lane.b32.xlu1 %v442_v53, %s6222_s7  ;;  %535 = vrot.lane.b32.xlu0 %v441_v54, %s6222_s7  ;;  %v397_v53 = vld [vmem:[%s6437_s10 + $0x90] sm:$0xff]  ;;  %s285_s7 = scalar_lea.vmem %s7643_s6, %s5114_s28 }
  0x83   : > { %v480_v39 = vpop.permute.xlu1 %479  ;;  %v476_v40 = vpop.permute.xlu0 %475 }
  0x84   : > { %v574_v41 = vsel %vm571_vm4, %v381_v37, %v480_v39  ;;  %v572_v42 = vsel %vm571_vm4, %v379_v38, %v476_v40 }
  0x85   : > { %607 = vst.msk [vmem:[#allocation2 + $0x31] sm:$0xff] %vm287_vm0, %v574_v41  ;;  %605 = vst.msk [vmem:[#allocation2 + $0x19] sm:$0xff] %vm287_vm0, %v572_v42 }
  0x87   : > { %v482_v45 = vpop.permute.xlu1 %481  ;;  %v478_v46 = vpop.permute.xlu0 %477 }
  0x88   : > { %v575_v47 = vsel %vm571_vm4, %v382_v43, %v482_v45  ;;  %v573_v48 = vsel %vm571_vm4, %v380_v44, %v478_v46  ;;  %v396_v43 = vld [vmem:[%s6437_s10 + $0x88] sm:$0xff]  ;;  %v395_v44 = vld [vmem:[%s6437_s10 + $0x80] sm:$0xff] }
  0x89   : > { %608 = vst.msk [vmem:[#allocation2 + $0x39] sm:$0xff] %vm287_vm0, %v575_v47  ;;  %606 = vst.msk [vmem:[#allocation2 + $0x21] sm:$0xff] %vm287_vm0, %v573_v48 }
  0x8b   : > { %v486_v51 = vpop.permute.xlu1 %485  ;;  %v484_v52 = vpop.permute.xlu0 %483 }
  0x8c   : > { %v577_v55 = vsel %vm571_vm4, %v384_v49, %v486_v51  ;;  %v576_v56 = vsel %vm571_vm4, %v383_v50, %v484_v52  ;;  %v690_v59 = vld [vmem:[#allocation2 + $0x31] sm:$0xff]  ;;  %v688_v0 = vld [vmem:[#allocation2 + $0x19] sm:$0xff] }
  0x8d   : > { %610 = vst.msk [vmem:[#allocation2 + $0x51] sm:$0xff] %vm287_vm0, %v577_v55  ;;  %609 = vst.msk [vmem:[#allocation2 + $0x49] sm:$0xff] %vm287_vm0, %v576_v56  ;;  %v398_v52 = vld [vmem:[%s6437_s10 + $0x98] sm:$0xff] }
  0x8f   : > { %v490_v60 = vpop.permute.xlu1 %489  ;;  %v488_v61 = vpop.permute.xlu0 %487 }
  0x90   : > { %v579_v62 = vsel %vm571_vm4, %v386_v57, %v490_v60  ;;  %v578_v63 = vsel %vm571_vm4, %v385_v58, %v488_v61  ;;  %v689_v1 = vld [vmem:[#allocation2 + $0x21] sm:$0xff]  ;;  %v691_v4 = vld [vmem:[#allocation2 + $0x39] sm:$0xff] }
  0x91   : > { %612 = vst.msk [vmem:[#allocation2 + $0x69] sm:$0xff] %vm287_vm0, %v579_v62  ;;  %611 = vst.msk [vmem:[#allocation2 + $0x61] sm:$0xff] %vm287_vm0, %v578_v63  ;;  %v6467_v5 = vpack.c.bf16 %v689_v1, %v688_v0  ;;  %v6471_v7 = vpack.c.bf16 %v691_v4, %v690_v59  ;;  %v400_v61 = vld [vmem:[%s6437_s10 + $0xa8] sm:$0xff]  ;;  %v399_v62 = vld [vmem:[%s6437_s10 + $0xa0] sm:$0xff] }
  0x93   : > { %5433 = vmatmul.mubr.msk.bf16.vlgmr.msra.gmra.mrb[0].mxu0 %vm287_vm0, %v6467_v5  ;;  %v494_v11 = vpop.permute.xlu1 %493  ;;  %v492_v12 = vpop.permute.xlu0 %491 }
  0x94   : > { %5465 = vmatpush3.bf16.msra.mxu0 %v998_v6  ;;  %5436 = vmatprep.mubr.msk.bf16.mxu0 %vm287_vm0, %v6471_v7  ;;  %v581_v3 = vsel %vm571_vm4, %v388_v8, %v494_v11  ;;  %v580_v13 = vsel %vm571_vm4, %v387_v9, %v492_v12  ;;  %v692_v14 = vld [vmem:[#allocation2 + $0x49] sm:$0xff]  ;;  %v693_v15 = vld [vmem:[#allocation2 + $0x51] sm:$0xff] }
  0x95   : > { %614 = vst.msk [vmem:[#allocation2 + $0x81] sm:$0xff] %vm287_vm0, %v581_v3  ;;  %613 = vst.msk [vmem:[#allocation2 + $0x79] sm:$0xff] %vm287_vm0, %v580_v13  ;;  %5994 = vmatprep.subr.msk.bf16.mxu0 %vm784_vm1, %v6478_v10  ;;  %v6492_v20 = vpack.c.bf16 %v693_v15, %v692_v14  ;;  %v402_v11 = vld [vmem:[%s6437_s10 + $0xb8] sm:$0xff]  ;;  %v401_v12 = vld [vmem:[%s6437_s10 + $0xb0] sm:$0xff] }
  0x97   : > { %v498_v18 = vpop.permute.xlu1 %497  ;;  %v496_v19 = vpop.permute.xlu0 %495 }
  0x98   : > { %v583_v21 = vsel %vm571_vm4, %v390_v16, %v498_v18  ;;  %v582_v22 = vsel %vm571_vm4, %v389_v17, %v496_v19  ;;  %v694_v23 = vld [vmem:[#allocation2 + $0x61] sm:$0xff]  ;;  %v695_v24 = vld [vmem:[#allocation2 + $0x69] sm:$0xff] }
  0x99   : > { %616 = vst.msk [vmem:[#allocation2 + $0x99] sm:$0xff] %vm287_vm0, %v583_v21  ;;  %615 = vst.msk [vmem:[#allocation2 + $0x91] sm:$0xff] %vm287_vm0, %v582_v22  ;;  %v6500_v27 = vpack.c.bf16 %v695_v24, %v694_v23  ;;  %v404_v19 = vld [vmem:[%s6437_s10 + $0xc8] sm:$0xff]  ;;  %v403_v21 = vld [vmem:[%s6437_s10 + $0xc0] sm:$0xff] }
  0x9b   : > { %5437 = vmatmul.mubr.msk.bf16.gmra.mrb[4].mxu0 %vm287_vm0, %v6492_v20  ;;  %v502_v28 = vpop.permute.xlu1 %501  ;;  %v500_v29 = vpop.permute.xlu0 %499 }
  0x9c   : > { %v585_v30 = vsel %vm571_vm4, %v392_v25, %v502_v28  ;;  %v584_v31 = vsel %vm571_vm4, %v391_v26, %v500_v29  ;;  %5440 = vmatprep.mubr.msk.bf16.mxu0 %vm287_vm0, %v6500_v27  ;;  %v696_v32 = vld [vmem:[#allocation2 + $0x79] sm:$0xff]  ;;  %v697_v33 = vld [vmem:[#allocation2 + $0x81] sm:$0xff] }
  0x9d   : > { %618 = vst.msk [vmem:[#allocation2 + $0xb1] sm:$0xff] %vm287_vm0, %v585_v30  ;;  %617 = vst.msk [vmem:[#allocation2 + $0xa9] sm:$0xff] %vm287_vm0, %v584_v31  ;;  %v6512_v38 = vpack.c.bf16 %v697_v33, %v696_v32  ;;  %v406_v30 = vld [vmem:[%s6437_s10 + $0xd8] sm:$0xff]  ;;  %v405_v31 = vld [vmem:[%s6437_s10 + $0xd0] sm:$0xff] }
  0x9f   : > { %v506_v36 = vpop.permute.xlu1 %505  ;;  %v504_v37 = vpop.permute.xlu0 %503 }
  0xa0   : > { %v587_v39 = vsel %vm571_vm4, %v394_v34, %v506_v36  ;;  %v586_v40 = vsel %vm571_vm4, %v393_v35, %v504_v37  ;;  %v698_v41 = vld [vmem:[#allocation2 + $0x91] sm:$0xff]  ;;  %v699_v42 = vld [vmem:[#allocation2 + $0x99] sm:$0xff] }
  0xa1   : > { %620 = vst.msk [vmem:[#allocation2 + $0xc9] sm:$0xff] %vm287_vm0, %v587_v39  ;;  %619 = vst.msk [vmem:[#allocation2 + $0xc1] sm:$0xff] %vm287_vm0, %v586_v40  ;;  %v6520_v45 = vpack.c.bf16 %v699_v42, %v698_v41  ;;  %v408_v40 = vld [vmem:[%s6437_s10 + $0xe8] sm:$0xff]  ;;  %v407_v41 = vld [vmem:[%s6437_s10 + $0xe0] sm:$0xff] }
  0xa3   : > { %5441 = vmatmul.mubr.msk.bf16.gmra.mrb[8].mxu0 %vm287_vm0, %v6512_v38  ;;  %v510_v46 = vpop.permute.xlu1 %509  ;;  %v508_v47 = vpop.permute.xlu0 %507 }
  0xa4   : > { %v589_v48 = vsel %vm571_vm4, %v396_v43, %v510_v46  ;;  %v588_v49 = vsel %vm571_vm4, %v395_v44, %v508_v47  ;;  %5444 = vmatprep.mubr.msk.bf16.mxu0 %vm287_vm0, %v6520_v45  ;;  %v700_v50 = vld [vmem:[#allocation2 + $0xa9] sm:$0xff]  ;;  %v701_v51 = vld [vmem:[#allocation2 + $0xb1] sm:$0xff] }
  0xa5   : > { %622 = vst.msk [vmem:[#allocation2 + $0xe1] sm:$0xff] %vm287_vm0, %v589_v48  ;;  %621 = vst.msk [vmem:[#allocation2 + $0xd9] sm:$0xff] %vm287_vm0, %v588_v49  ;;  %v6532_v56 = vpack.c.bf16 %v701_v51, %v700_v50 }
  0xa7   : > { %v514_v54 = vpop.permute.xlu1 %513  ;;  %v512_v55 = vpop.permute.xlu0 %511 }
  0xa8   : > { %v591_v57 = vsel %vm571_vm4, %v398_v52, %v514_v54  ;;  %v590_v58 = vsel %vm571_vm4, %v397_v53, %v512_v55  ;;  %v702_v59 = vld [vmem:[#allocation2 + $0xc1] sm:$0xff]  ;;  %v703_v60 = vld [vmem:[#allocation2 + $0xc9] sm:$0xff] }
  0xa9   : > { %624 = vst.msk [vmem:[#allocation2 + $0xf9] sm:$0xff] %vm287_vm0, %v591_v57  ;;  %623 = vst.msk [vmem:[#allocation2 + $0xf1] sm:$0xff] %vm287_vm0, %v590_v58  ;;  %v6540_v63 = vpack.c.bf16 %v703_v60, %v702_v59  ;;  %v637_v57 = vld [vmem:[#allocation2] sm:$0xff]  ;;  %v638_v58 = vld [vmem:[#allocation2 + $0x8] sm:$0xff] }
  0xaa   : > { %v669_v60 = vpack.c.bf16 %v638_v58, %v637_v57 }
  0xab   : > { %5445 = vmatmul.mubr.msk.bf16.gmra.mrb[12].mxu0 %vm287_vm0, %v6532_v56  ;;  %v518_v0 = vpop.permute.xlu1 %517  ;;  %v516_v1 = vpop.permute.xlu0 %515 }
  0xac   : > { %v593_v4 = vsel %vm571_vm4, %v400_v61, %v518_v0  ;;  %v592_v6 = vsel %vm571_vm4, %v399_v62, %v516_v1  ;;  %5448 = vmatprep.mubr.msk.bf16.mxu0 %vm287_vm0, %v6540_v63  ;;  %v704_v8 = vld [vmem:[#allocation2 + $0xd9] sm:$0xff]  ;;  %v705_v9 = vld [vmem:[#allocation2 + $0xe1] sm:$0xff]  ;;  %v641_v62 = vld [vmem:[#allocation2 + $0x30] sm:$0xff] }
  0xad   : > { %626 = vst.msk [vmem:[#allocation2 + $0x111] sm:$0xff] %vm287_vm0, %v593_v4  ;;  %625 = vst.msk [vmem:[#allocation2 + $0x109] sm:$0xff] %vm287_vm0, %v592_v6  ;;  %v6552_v14 = vpack.c.bf16 %v705_v9, %v704_v8  ;;  %v640_v61 = vld [vmem:[#allocation2 + $0x20] sm:$0xff]  ;;  %v642_v0 = vld [vmem:[#allocation2 + $0x38] sm:$0xff]  ;;  %v1260_v6 = vsel %vm784_vm1, %v6478_v10, 0 }
  0xae   : > { %v639_v1 = vld [vmem:[#allocation2 + $0x18] sm:$0xff]  ;;  %v6607_v8 = vpack.c.bf16 %v642_v0, %v641_v62  ;;  %v6612_v9 = vld [vmem:[%s7639_s2 + $0xc] sm:$0xf]  ;;  %v645_v10 = vld [vmem:[#allocation2 + $0x60] sm:$0xff] }
  0xaf   : > { %v522_v3 = vpop.permute.xlu1 %521  ;;  %v520_v13 = vpop.permute.xlu0 %519  ;;  %v6603_v4 = vpack.c.bf16 %v640_v61, %v639_v1  ;;  %v1161_v0 = vld [vmem:[#allocation2 + $0x2] sm:$0xff]  ;;  %v1162_v1 = vld [vmem:[#allocation2 + $0xa] sm:$0xff] }
  0xb0   : > { %v595_v15 = vsel %vm571_vm4, %v402_v11, %v522_v3  ;;  %v594_v16 = vsel %vm571_vm4, %v401_v12, %v520_v13  ;;  %v706_v17 = vld [vmem:[#allocation2 + $0xf1] sm:$0xff]  ;;  %v707_v18 = vld [vmem:[#allocation2 + $0xf9] sm:$0xff]  ;;  %v643_v11 = vld [vmem:[#allocation2 + $0x48] sm:$0xff] }
  0xb1   : > { %628 = vst.msk [vmem:[#allocation2 + $0x129] sm:$0xff] %vm287_vm0, %v595_v15  ;;  %627 = vst.msk [vmem:[#allocation2 + $0x121] sm:$0xff] %vm287_vm0, %v594_v16  ;;  %v6560_v22 = vpack.c.bf16 %v707_v18, %v706_v17  ;;  %v644_v12 = vld [vmem:[#allocation2 + $0x50] sm:$0xff]  ;;  %v646_v3 = vld [vmem:[#allocation2 + $0x68] sm:$0xff] }
  0xb2   : > { %v6620_v13 = vpack.c.bf16 %v644_v12, %v643_v11  ;;  %v6622_v15 = vpack.c.bf16 %v646_v3, %v645_v10  ;;  %v647_v16 = vld [vmem:[#allocation2 + $0x78] sm:$0xff]  ;;  %v648_v17 = vld [vmem:[#allocation2 + $0x80] sm:$0xff]  ;;  %v649_v18 = vld [vmem:[#allocation2 + $0x90] sm:$0xff]  ;;  %v1193_v12 = vpack.c.bf16 %v1162_v1, %v1161_v0 }
  0xb3   : > { %5449 = vmatmul.mubr.msk.bf16.gmra.mrb[16].mxu0 %vm287_vm0, %v6552_v14  ;;  %v526_v23 = vpop.permute.xlu1 %525  ;;  %v524_v24 = vpop.permute.xlu0 %523  ;;  %v1163_v3 = vld [vmem:[#allocation2 + $0x1a] sm:$0xff]  ;;  %v1181_v0 = vld [vmem:[#allocation2 + $0xf2] sm:$0xff] }
  0xb4   : > { %v597_v25 = vsel %vm571_vm4, %v404_v19, %v526_v23  ;;  %v596_v26 = vsel %vm571_vm4, %v403_v21, %v524_v24  ;;  %5452 = vmatprep.mubr.msk.bf16.mxu0 %vm287_vm0, %v6560_v22  ;;  %v708_v28 = vld [vmem:[#allocation2 + $0x109] sm:$0xff]  ;;  %v709_v29 = vld [vmem:[#allocation2 + $0x111] sm:$0xff]  ;;  %v6628_v21 = vpack.c.bf16 %v648_v17, %v647_v16  ;;  %v1182_v1 = vld [vmem:[#allocation2 + $0xfa] sm:$0xff] }
  0xb5   : > { %630 = vst.msk [vmem:[#allocation2 + $0x141] sm:$0xff] %vm287_vm0, %v597_v25  ;;  %629 = vst.msk [vmem:[#allocation2 + $0x139] sm:$0xff] %vm287_vm0, %v596_v26  ;;  %v6572_v34 = vpack.c.bf16 %v709_v29, %v708_v28  ;;  %v650_v19 = vld [vmem:[#allocation2 + $0x98] sm:$0xff]  ;;  %v651_v24 = vld [vmem:[#allocation2 + $0xa8] sm:$0xff] }
  0xb6   : > { %v6630_v23 = vpack.c.bf16 %v650_v19, %v649_v18  ;;  %v652_v25 = vld [vmem:[#allocation2 + $0xb0] sm:$0xff]  ;;  %v653_v26 = vld [vmem:[#allocation2 + $0xc0] sm:$0xff]  ;;  %v654_v28 = vld [vmem:[#allocation2 + $0xc8] sm:$0xff] }
  0xb7   : > { %v530_v32 = vpop.permute.xlu1 %529  ;;  %v528_v33 = vpop.permute.xlu0 %527  ;;  %v6636_v29 = vpack.c.bf16 %v652_v25, %v651_v24  ;;  %v1164_v16 = vld [vmem:[#allocation2 + $0x22] sm:$0xff]  ;;  %v1165_v17 = vld [vmem:[#allocation2 + $0x32] sm:$0xff]  ;;  %v1166_v18 = vld [vmem:[#allocation2 + $0x3a] sm:$0xff]  ;;  %v1554_v24 = vsel %vm784_vm1, %v6612_v9, 0 }
  0xb8   : > { %v599_v35 = vsel %vm571_vm4, %v406_v30, %v530_v32  ;;  %v598_v36 = vsel %vm571_vm4, %v405_v31, %v528_v33  ;;  %v710_v37 = vld [vmem:[#allocation2 + $0x121] sm:$0xff]  ;;  %v711_v39 = vld [vmem:[#allocation2 + $0x129] sm:$0xff]  ;;  %v6638_v30 = vpack.c.bf16 %v654_v28, %v653_v26  ;;  %v655_v31 = vld [vmem:[#allocation2 + $0xd8] sm:$0xff]  ;;  %v6679_v19 = vpack.c.bf16 %v1164_v16, %v1163_v3 }
  0xb9   : > { %632 = vst.msk [vmem:[#allocation2 + $0x159] sm:$0xff] %vm287_vm0, %v599_v35  ;;  %631 = vst.msk [vmem:[#allocation2 + $0x151] sm:$0xff] %vm287_vm0, %v598_v36  ;;  %v6580_v42 = vpack.c.bf16 %v711_v39, %v710_v37  ;;  %v656_v32 = vld [vmem:[#allocation2 + $0xe0] sm:$0xff]  ;;  %v657_v33 = vld [vmem:[#allocation2 + $0xf0] sm:$0xff]  ;;  %v6683_v25 = vpack.c.bf16 %v1166_v18, %v1165_v17 }
  0xba   : > { %v658_v35 = vld [vmem:[#allocation2 + $0xf8] sm:$0xff]  ;;  %v6644_v36 = vpack.c.bf16 %v656_v32, %v655_v31  ;;  %v659_v39 = vld [vmem:[#allocation2 + $0x108] sm:$0xff]  ;;  %v4975_v26 = vld [vmem:[%s7639_s2 + $0x10] sm:$0xf] }
  0xbb   : > { %5453 = vmatmul.mubr.msk.bf16.gmra.mrb[20].mxu0 %vm287_vm0, %v6572_v34  ;;  %v534_v43 = vpop.permute.xlu1 %533  ;;  %v532_v44 = vpop.permute.xlu0 %531  ;;  %v6646_v37 = vpack.c.bf16 %v658_v35, %v657_v33  ;;  %v1167_v28 = vld [vmem:[#allocation2 + $0x4a] sm:$0xff]  ;;  %v1168_v31 = vld [vmem:[#allocation2 + $0x52] sm:$0xff]  ;;  %v1169_v32 = vld [vmem:[#allocation2 + $0x62] sm:$0xff] }
  0xbc   : > { %v601_v46 = vsel %vm571_vm4, %v408_v40, %v534_v43  ;;  %v600_v47 = vsel %vm571_vm4, %v407_v41, %v532_v44  ;;  %5456 = vmatprep.mubr.msk.bf16.mxu0 %vm287_vm0, %v6580_v42  ;;  %v712_v48 = vld [vmem:[#allocation2 + $0x139] sm:$0xff]  ;;  %v713_v49 = vld [vmem:[#allocation2 + $0x141] sm:$0xff]  ;;  %v660_v40 = vld [vmem:[#allocation2 + $0x110] sm:$0xff] }
  0xbd   : > { %634 = vst.msk [vmem:[#allocation2 + $0x171] sm:$0xff] %vm287_vm0, %v601_v46  ;;  %633 = vst.msk [vmem:[#allocation2 + $0x169] sm:$0xff] %vm287_vm0, %v600_v47  ;;  %v6590_v50 = vpack.c.bf16 %v713_v49, %v712_v48  ;;  %v661_v41 = vld [vmem:[#allocation2 + $0x120] sm:$0xff]  ;;  %v662_v43 = vld [vmem:[#allocation2 + $0x128] sm:$0xff]  ;;  %v6652_v44 = vpack.c.bf16 %v660_v40, %v659_v39 }
  0xbe   : > { %v6654_v46 = vpack.c.bf16 %v662_v43, %v661_v41  ;;  %v410_v47 = vld [vmem:[%s6437_s10 + $0xf8] sm:$0xff]  ;;  %v409_v48 = vld [vmem:[%s6437_s10 + $0xf0] sm:$0xff]  ;;  %v1172_v40 = vld [vmem:[#allocation2 + $0x82] sm:$0xff] }
  0xbf   : > { %v663_v49 = vld [vmem:[#allocation2 + $0x138] sm:$0xff]  ;;  %v1170_v33 = vld [vmem:[#allocation2 + $0x6a] sm:$0xff]  ;;  %v1185_v16 = vld [vmem:[#allocation2 + $0x122] sm:$0xff] }
  0xc0   : > { %v714_v51 = vld [vmem:[#allocation2 + $0x151] sm:$0xff]  ;;  %v715_v52 = vld [vmem:[#allocation2 + $0x159] sm:$0xff]  ;;  %v6695_v35 = vpack.c.bf16 %v1170_v33, %v1169_v32 }
  0xc1   : > { %v6592_v53 = vpack.c.bf16 %v715_v52, %v714_v51  ;;  %v664_v51 = vld [vmem:[#allocation2 + $0x140] sm:$0xff]  ;;  %v538_v52 = vpop.permute.xlu1 %537  ;;  %v666_v57 = vld [vmem:[#allocation2 + $0x158] sm:$0xff]  ;;  %v1186_v17 = vld [vmem:[#allocation2 + $0x12a] sm:$0xff] }
  0xc2   : > { %v603_v58 = vsel %vm571_vm4, %v410_v47, %v538_v52  ;;  %v6666_v61 = vpack.c.bf16 %v664_v51, %v663_v49  ;;  %v1171_v39 = vld [vmem:[#allocation2 + $0x7a] sm:$0xff]  ;;  %v1173_v41 = vld [vmem:[#allocation2 + $0x92] sm:$0xff]  ;;  %v1175_v49 = vld [vmem:[#allocation2 + $0xaa] sm:$0xff] }
  0xc3   : > { %5457 = vmatmul.mubr.msk.bf16.gmra.mrb[24].mxu0 %vm287_vm0, %v6590_v50  ;;  %636 = vst.msk [vmem:[#allocation2 + $0x189] sm:$0xff] %vm287_vm0, %v603_v58  ;;  %v1174_v43 = vld [vmem:[#allocation2 + $0x9a] sm:$0xff]  ;;  %v6701_v47 = vpack.c.bf16 %v1172_v40, %v1171_v39  ;;  %v1176_v51 = vld [vmem:[#allocation2 + $0xb2] sm:$0xff]  ;;  %v1177_v52 = vld [vmem:[#allocation2 + $0xc2] sm:$0xff] }
  0xc4   : > { %5460 = vmatprep.mubr.msk.bf16.mxu0 %vm287_vm0, %v6592_v53  ;;  %v716_v54 = vld [vmem:[#allocation2 + $0x169] sm:$0xff]  ;;  %v717_v55 = vld [vmem:[#allocation2 + $0x171] sm:$0xff]  ;;  %v1179_v58 = vld [vmem:[#allocation2 + $0xda] sm:$0xff] }
  0xc5   : > { %v6598_v59 = vpack.c.bf16 %v717_v55, %v716_v54  ;;  %v536_v54 = vpop.permute.xlu0 %535  ;;  %v665_v55 = vld [vmem:[#allocation2 + $0x150] sm:$0xff]  ;;  %v1190_v33 = vld [vmem:[#allocation2 + $0x15a] sm:$0xff] }
  0xc6   : > { %v6668_v62 = vpack.c.bf16 %v666_v57, %v665_v55  ;;  %v668_v11 = vld [vmem:[#allocation2 + $0x170] sm:$0xff]  ;;  %v6709_v55 = vpack.c.bf16 %v1176_v51, %v1175_v49  ;;  %v1848_v51 = vsel %vm784_vm1, %v4975_v26, 0 }
  0xc7   : > { %v1184_v3 = vld [vmem:[#allocation2 + $0x112] sm:$0xff] }
  0xc8   : > { %v1189_v32 = vld [vmem:[#allocation2 + $0x152] sm:$0xff] }
  0xc9   : > { %v6735_v40 = vpack.c.bf16 %v1190_v33, %v1189_v32  ;;  %v2643_v32 = vld [vmem:[#allocation2 + $0xb1] sm:$0xff] }
  0xcb   : > { %5461 = vmatmul.mubr.msk.bf16.gmra.mrb[28].mxu0 %vm287_vm0, %v6598_v59 }
  0xcc   : > { %5466 = vmatprep.mubr.msk.bf16.mxu0 %vm287_vm0, %v669_v60  ;;  %v602_v60 = vsel %vm571_vm4, %v409_v48, %v536_v54  ;;  %v6703_v48 = vpack.c.bf16 %v1174_v43, %v1173_v41  ;;  %v1178_v54 = vld [vmem:[#allocation2 + $0xca] sm:$0xff]  ;;  %v1192_v43 = vld [vmem:[#allocation2 + $0x172] sm:$0xff] }
  0xcd   : > { %635 = vst.msk [vmem:[#allocation2 + $0x181] sm:$0xff] %vm287_vm0, %v602_v60  ;;  %v6711_v57 = vpack.c.bf16 %v1178_v54, %v1177_v52  ;;  %v1180_v60 = vld [vmem:[#allocation2 + $0xe2] sm:$0xff]  ;;  %v1191_v41 = vld [vmem:[#allocation2 + $0x16a] sm:$0xff]  ;;  %v4992_v52 = vld [vmem:[%s7639_s2 + $0x14] sm:$0xf] }
  0xce   : > { %v6741_v49 = vpack.c.bf16 %v1192_v43, %v1191_v41 }
  0xd3   : > { %5467 = vmatmul.mubr.msk.bf16.vlgmr.msra.gmra.mrb[0].mxu0 %vm287_vm0, %v6603_v4 }
  0xd4   : > { %5499 = vmatpush3.bf16.msra.mxu0 %v1260_v6  ;;  %5470 = vmatprep.mubr.msk.bf16.mxu0 %vm287_vm0, %v6607_v8  ;;  %v667_v6 = vld [vmem:[#allocation2 + $0x168] sm:$0xff] }
  0xd5   : > { %5995 = vmatprep.subr.msk.bf16.mxu0 %vm784_vm1, %v6612_v9  ;;  %v6674_v10 = vpack.c.bf16 %v668_v11, %v667_v6  ;;  %v6693_v9 = vpack.c.bf16 %v1168_v31, %v1167_v28  ;;  %v6717_v6 = vpack.c.bf16 %v1180_v60, %v1179_v58  ;;  %v6719_v11 = vpack.c.bf16 %v1182_v1, %v1181_v0  ;;  %v1187_v28 = vld [vmem:[#allocation2 + $0x13a] sm:$0xff]  ;;  %v1188_v31 = vld [vmem:[#allocation2 + $0x142] sm:$0xff] }
  0xd6   : > { %v6733_v39 = vpack.c.bf16 %v1188_v31, %v1187_v28  ;;  %v2142_v58 = vsel %vm784_vm1, %v4992_v52, 0  ;;  %v5009_v60 = vld [vmem:[%s7639_s2 + $0x18] sm:$0xf]  ;;  %v5043_v1 = vld [vmem:[%s7639_s2 + $0x20] sm:$0xf]  ;;  %v2642_v31 = vld [vmem:[#allocation2 + $0xa9] sm:$0xff] }
  0xd7   : > { %v2669_v33 = vpack.c.bf16 %v2643_v32, %v2642_v31 }
  0xdb   : > { %5471 = vmatmul.mubr.msk.bf16.gmra.mrb[4].mxu0 %vm287_vm0, %v6620_v13 }
  0xdc   : > { %5474 = vmatprep.mubr.msk.bf16.mxu0 %vm287_vm0, %v6622_v15 }
  0xe3   : > { %5475 = vmatmul.mubr.msk.bf16.gmra.mrb[8].mxu0 %vm287_vm0, %v6628_v21 }
  0xe4   : > { %5478 = vmatprep.mubr.msk.bf16.mxu0 %vm287_vm0, %v6630_v23 }
  0xeb   : > { %5479 = vmatmul.mubr.msk.bf16.gmra.mrb[12].mxu0 %vm287_vm0, %v6636_v29 }
  0xec   : > { %5482 = vmatprep.mubr.msk.bf16.mxu0 %vm287_vm0, %v6638_v30 }
  0xf3   : > { %5483 = vmatmul.mubr.msk.bf16.gmra.mrb[16].mxu0 %vm287_vm0, %v6644_v36 }
  0xf4   : > { %5486 = vmatprep.mubr.msk.bf16.mxu0 %vm287_vm0, %v6646_v37 }
  0xfb   : > { %5487 = vmatmul.mubr.msk.bf16.gmra.mrb[20].mxu0 %vm287_vm0, %v6652_v44 }
  0xfc   : > { %5490 = vmatprep.mubr.msk.bf16.mxu0 %vm287_vm0, %v6654_v46 }
 0x103   : > { %5491 = vmatmul.mubr.msk.bf16.gmra.mrb[24].mxu0 %vm287_vm0, %v6666_v61 }
 0x104   : > { %5494 = vmatprep.mubr.msk.bf16.mxu0 %vm287_vm0, %v6668_v62 }
 0x10b   : > { %5495 = vmatmul.mubr.msk.bf16.gmra.mrb[28].mxu0 %vm287_vm0, %v6674_v10 }
 0x10c   : > { %5500 = vmatprep.mubr.msk.bf16.mxu0 %vm287_vm0, %v1193_v12  ;;  %v1183_v12 = vld [vmem:[#allocation2 + $0x10a] sm:$0xff] }
 0x10d   : > { %v6725_v18 = vpack.c.bf16 %v1184_v3, %v1183_v12  ;;  %v2639_v12 = vld [vmem:[#allocation2 + $0x81] sm:$0xff]  ;;  %v2640_v3 = vld [vmem:[#allocation2 + $0x91] sm:$0xff] }
 0x113   : > { %5501 = vmatmul.mubr.msk.bf16.vlgmr.msra.gmra.mrb[0].mxu0 %vm287_vm0, %v6679_v19 }
 0x114   : > { %5533 = vmatpush3.bf16.msra.mxu0 %v1554_v24  ;;  %5504 = vmatprep.mubr.msk.bf16.mxu0 %vm287_vm0, %v6683_v25  ;;  %v6727_v24 = vpack.c.bf16 %v1186_v17, %v1185_v16  ;;  %v2641_v16 = vld [vmem:[#allocation2 + $0x99] sm:$0xff] }
 0x115   : > { %5996 = vmatprep.subr.msk.bf16.mxu0 %vm784_vm1, %v4975_v26  ;;  %v1486_v26 = vld [vmem:[#allocation2 + $0x188] sm:$0xff]  ;;  %v2668_v28 = vpack.c.bf16 %v2641_v16, %v2640_v3 }
 0x11b   : > { %5505 = vmatmul.mubr.msk.bf16.gmra.mrb[4].mxu0 %vm287_vm0, %v6693_v9 }
 0x11c   : > { %5508 = vmatprep.mubr.msk.bf16.mxu0 %vm287_vm0, %v6695_v35 }
 0x123   : > { %5509 = vmatmul.mubr.msk.bf16.gmra.mrb[8].mxu0 %vm287_vm0, %v6701_v47 }
 0x124   : > { %5512 = vmatprep.mubr.msk.bf16.mxu0 %vm287_vm0, %v6703_v48 }
 0x12b   : > { %5513 = vmatmul.mubr.msk.bf16.gmra.mrb[12].mxu0 %vm287_vm0, %v6709_v55 }
 0x12c   : > { %5516 = vmatprep.mubr.msk.bf16.mxu0 %vm287_vm0, %v6711_v57 }
 0x133   : > { %5517 = vmatmul.mubr.msk.bf16.gmra.mrb[16].mxu0 %vm287_vm0, %v6717_v6 }
 0x134   : > { %5520 = vmatprep.mubr.msk.bf16.mxu0 %vm287_vm0, %v6719_v11 }
 0x13b   : > { %5521 = vmatmul.mubr.msk.bf16.gmra.mrb[20].mxu0 %vm287_vm0, %v6725_v18 }
 0x13c   : > { %5524 = vmatprep.mubr.msk.bf16.mxu0 %vm287_vm0, %v6727_v24 }
 0x143   : > { %5525 = vmatmul.mubr.msk.bf16.gmra.mrb[24].mxu0 %vm287_vm0, %v6733_v39 }
 0x144   : > { %5528 = vmatprep.mubr.msk.bf16.mxu0 %vm287_vm0, %v6735_v40 }
 0x14b   : > { %5529 = vmatmul.mubr.msk.bf16.gmra.mrb[28].mxu0 %vm287_vm0, %v6741_v49 }
 0x14c   : > { %5534 = vmatprep.mubr.msk.bf16.mxu0 %vm287_vm0, %v6603_v4  ;;  %v1485_v4 = vld [vmem:[#allocation2 + $0x180] sm:$0xff] }
 0x14d   : > { %v6780_v54 = vpack.c.bf16 %v1486_v26, %v1485_v4 }
 0x153   : > { %5535 = vmatmul.mubr.msk.bf16.vlgmr.msra.gmra.mrb[0].mxu0 %vm287_vm0, %v6607_v8 }
 0x154   : > { %5567 = vmatpush3.bf16.msra.mxu0 %v1848_v51  ;;  %5538 = vmatprep.mubr.msk.bf16.mxu0 %vm287_vm0, %v6620_v13 }
 0x155   : > { %5997 = vmatprep.subr.msk.bf16.mxu0 %vm784_vm1, %v4992_v52 }
 0x15b   : > { %5539 = vmatmul.mubr.msk.bf16.gmra.mrb[4].mxu0 %vm287_vm0, %v6622_v15 }
 0x15c   : > { %5542 = vmatprep.mubr.msk.bf16.mxu0 %vm287_vm0, %v6628_v21 }
 0x163   : > { %5543 = vmatmul.mubr.msk.bf16.gmra.mrb[8].mxu0 %vm287_vm0, %v6630_v23 }
 0x164   : > { %5546 = vmatprep.mubr.msk.bf16.mxu0 %vm287_vm0, %v6636_v29 }
 0x16b   : > { %5547 = vmatmul.mubr.msk.bf16.gmra.mrb[12].mxu0 %vm287_vm0, %v6638_v30 }
 0x16c   : > { %5550 = vmatprep.mubr.msk.bf16.mxu0 %vm287_vm0, %v6644_v36 }
 0x173   : > { %5551 = vmatmul.mubr.msk.bf16.gmra.mrb[16].mxu0 %vm287_vm0, %v6646_v37 }
 0x174   : > { %5554 = vmatprep.mubr.msk.bf16.mxu0 %vm287_vm0, %v6652_v44 }
 0x17b   : > { %5555 = vmatmul.mubr.msk.bf16.gmra.mrb[20].mxu0 %vm287_vm0, %v6654_v46 }
 0x17c   : > { %5558 = vmatprep.mubr.msk.bf16.mxu0 %vm287_vm0, %v6666_v61 }
 0x183   : > { %5559 = vmatmul.mubr.msk.bf16.gmra.mrb[24].mxu0 %vm287_vm0, %v6668_v62 }
 0x184   : > { %5562 = vmatprep.mubr.msk.bf16.mxu0 %vm287_vm0, %v6674_v10 }
 0x18b   : > { %5563 = vmatmul.mubr.msk.bf16.gmra.mrb[28].mxu0 %vm287_vm0, %v6780_v54 }
 0x18c   : > { %5568 = vmatprep.mubr.msk.bf16.mxu0 %vm287_vm0, %v6467_v5  ;;  %v1779_v5 = vld [vmem:[#allocation2 + $0x181] sm:$0xff] }
 0x193   : > { %5569 = vmatmul.mubr.msk.bf16.vlgmr.msra.gmra.mrb[0].mxu0 %vm287_vm0, %v6471_v7  ;;  %v1780_v7 = vld [vmem:[#allocation2 + $0x189] sm:$0xff] }
 0x194   : > { %5601 = vmatpush3.bf16.msra.mxu0 %v2142_v58  ;;  %5572 = vmatprep.mubr.msk.bf16.mxu0 %vm287_vm0, %v6492_v20  ;;  %v6819_v20 = vpack.c.bf16 %v1780_v7, %v1779_v5 }
 0x195   : > { %5998 = vmatprep.subr.msk.bf16.mxu0 %vm784_vm1, %v5009_v60 }
 0x19b   : > { %5573 = vmatmul.mubr.msk.bf16.gmra.mrb[4].mxu0 %vm287_vm0, %v6500_v27  ;;  %v2437_v27 = vsel %vm784_vm1, %v5009_v60, 0 }
 0x19c   : > { %5576 = vmatprep.mubr.msk.bf16.mxu0 %vm287_vm0, %v6512_v38  ;;  %v5026_v38 = vld [vmem:[%s7639_s2 + $0x1c] sm:$0xf] }
 0x19d   : > { %v2731_v0 = vsel %vm784_vm1, %v5026_v38, 0 }
 0x1a3   : > { %5577 = vmatmul.mubr.msk.bf16.gmra.mrb[8].mxu0 %vm287_vm0, %v6520_v45  ;;  %v2073_v45 = vld [vmem:[#allocation2 + $0x182] sm:$0xff] }
 0x1a4   : > { %5580 = vmatprep.mubr.msk.bf16.mxu0 %vm287_vm0, %v6532_v56  ;;  %v2074_v56 = vld [vmem:[#allocation2 + $0x18a] sm:$0xff] }
 0x1ab   : > { %5581 = vmatmul.mubr.msk.bf16.gmra.mrb[12].mxu0 %vm287_vm0, %v6540_v63 }
 0x1ac   : > { %5584 = vmatprep.mubr.msk.bf16.mxu0 %vm287_vm0, %v6552_v14 }
 0x1b3   : > { %5585 = vmatmul.mubr.msk.bf16.gmra.mrb[16].mxu0 %vm287_vm0, %v6560_v22 }
 0x1b4   : > { %5588 = vmatprep.mubr.msk.bf16.mxu0 %vm287_vm0, %v6572_v34 }
 0x1bb   : > { %5589 = vmatmul.mubr.msk.bf16.gmra.mrb[20].mxu0 %vm287_vm0, %v6580_v42 }
 0x1bc   : > { %5592 = vmatprep.mubr.msk.bf16.mxu0 %vm287_vm0, %v6590_v50 }
 0x1c3   : > { %5593 = vmatmul.mubr.msk.bf16.gmra.mrb[24].mxu0 %vm287_vm0, %v6592_v53 }
 0x1c4   : > { %5596 = vmatprep.mubr.msk.bf16.mxu0 %vm287_vm0, %v6598_v59 }
 0x1cb   : > { %5597 = vmatmul.mubr.msk.bf16.gmra.mrb[28].mxu0 %vm287_vm0, %v6819_v20 }
 0x1cc   : > { %5602 = vmatprep.mubr.msk.bf16.mxu0 %vm287_vm0, %v6679_v19  ;;  %v6858_v19 = vpack.c.bf16 %v2074_v56, %v2073_v45 }
 0x1d3   : > { %5603 = vmatmul.mubr.msk.bf16.vlgmr.msra.gmra.mrb[0].mxu0 %vm287_vm0, %v6683_v25 }
 0x1d4   : > { %5635 = vmatpush3.bf16.msra.mxu0 %v2437_v27  ;;  %5606 = vmatprep.mubr.msk.bf16.mxu0 %vm287_vm0, %v6693_v9 }
 0x1d5   : > { %5999 = vmatprep.subr.msk.bf16.mxu0 %vm784_vm1, %v5026_v38 }
 0x1db   : > { %5607 = vmatmul.mubr.msk.bf16.gmra.mrb[4].mxu0 %vm287_vm0, %v6695_v35 }
 0x1dc   : > { %5610 = vmatprep.mubr.msk.bf16.mxu0 %vm287_vm0, %v6701_v47 }
 0x1e3   : > { %5611 = vmatmul.mubr.msk.bf16.gmra.mrb[8].mxu0 %vm287_vm0, %v6703_v48 }
 0x1e4   : > { %5614 = vmatprep.mubr.msk.bf16.mxu0 %vm287_vm0, %v6709_v55 }
 0x1eb   : > { %5615 = vmatmul.mubr.msk.bf16.gmra.mrb[12].mxu0 %vm287_vm0, %v6711_v57 }
 0x1ec   : > { %5618 = vmatprep.mubr.msk.bf16.mxu0 %vm287_vm0, %v6717_v6 }
 0x1f3   : > { %5619 = vmatmul.mubr.msk.bf16.gmra.mrb[16].mxu0 %vm287_vm0, %v6719_v11 }
 0x1f4   : > { %5622 = vmatprep.mubr.msk.bf16.mxu0 %vm287_vm0, %v6725_v18 }
 0x1fb   : > { %5623 = vmatmul.mubr.msk.bf16.gmra.mrb[20].mxu0 %vm287_vm0, %v6727_v24 }
 0x1fc   : > { %5626 = vmatprep.mubr.msk.bf16.mxu0 %vm287_vm0, %v6733_v39 }
 0x203   : > { %5627 = vmatmul.mubr.msk.bf16.gmra.mrb[24].mxu0 %vm287_vm0, %v6735_v40 }
 0x204   : > { %5630 = vmatprep.mubr.msk.bf16.mxu0 %vm287_vm0, %v6741_v49 }
 0x20b   : > { %5631 = vmatmul.mubr.msk.bf16.gmra.mrb[28].mxu0 %vm287_vm0, %v6858_v19 }
 0x20c   : > { %5636 = vmatprep.mubr.msk.bf16.mxu0 %vm287_vm0, %v6607_v8  ;;  %v2368_v8 = vld [vmem:[#allocation2 + $0x198] sm:$0xff] }
 0x213   : > { %5637 = vmatmul.mubr.msk.bf16.vlgmr.msra.gmra.mrb[0].mxu0 %vm287_vm0, %v6620_v13  ;;  %v2369_v13 = vld [vmem:[#allocation2 + $0x1a0] sm:$0xff] }
 0x214   : > { %5669 = vmatpush3.bf16.msra.mxu0 %v2731_v0  ;;  %5640 = vmatprep.mubr.msk.bf16.mxu0 %vm287_vm0, %v6622_v15  ;;  %v2385_v15 = vpack.c.bf16 %v2369_v13, %v2368_v8 }
 0x215   : > { %6000 = vmatprep.subr.msk.bf16.mxu0 %vm784_vm1, %v5043_v1 }
 0x21b   : > { %5641 = vmatmul.mubr.msk.bf16.gmra.mrb[4].mxu0 %vm287_vm0, %v6628_v21  ;;  %v2632_v21 = vld [vmem:[#allocation2 + $0x31] sm:$0xff] }
 0x21c   : > { %5644 = vmatprep.mubr.msk.bf16.mxu0 %vm287_vm0, %v6630_v23  ;;  %v2633_v23 = vld [vmem:[#allocation2 + $0x39] sm:$0xff] }
 0x223   : > { %5645 = vmatmul.mubr.msk.bf16.gmra.mrb[8].mxu0 %vm287_vm0, %v6636_v29  ;;  %v2664_v29 = vpack.c.bf16 %v2633_v23, %v2632_v21 }
 0x224   : > { %5648 = vmatprep.mubr.msk.bf16.mxu0 %vm287_vm0, %v6638_v30  ;;  %v2634_v30 = vld [vmem:[#allocation2 + $0x49] sm:$0xff] }
 0x22b   : > { %5649 = vmatmul.mubr.msk.bf16.gmra.mrb[12].mxu0 %vm287_vm0, %v6644_v36  ;;  %v2635_v36 = vld [vmem:[#allocation2 + $0x51] sm:$0xff] }
 0x22c   : > { %5652 = vmatprep.mubr.msk.bf16.mxu0 %vm287_vm0, %v6646_v37  ;;  %v2636_v37 = vld [vmem:[#allocation2 + $0x61] sm:$0xff] }
 0x233   : > { %5653 = vmatmul.mubr.msk.bf16.gmra.mrb[16].mxu0 %vm287_vm0, %v6652_v44  ;;  %v2637_v44 = vld [vmem:[#allocation2 + $0x69] sm:$0xff] }
 0x234   : > { %5656 = vmatprep.mubr.msk.bf16.mxu0 %vm287_vm0, %v6654_v46  ;;  %v2665_v46 = vpack.c.bf16 %v2635_v36, %v2634_v30 }
 0x23b   : > { %5657 = vmatmul.mubr.msk.bf16.gmra.mrb[20].mxu0 %vm287_vm0, %v6666_v61  ;;  %v3025_v61 = vsel %vm784_vm1, %v5043_v1, 0 }
 0x23c   : > { %5660 = vmatprep.mubr.msk.bf16.mxu0 %vm287_vm0, %v6668_v62  ;;  %v2666_v62 = vpack.c.bf16 %v2637_v44, %v2636_v37 }
 0x243   : > { %5661 = vmatmul.mubr.msk.bf16.gmra.mrb[24].mxu0 %vm287_vm0, %v6674_v10  ;;  %v2638_v10 = vld [vmem:[#allocation2 + $0x79] sm:$0xff] }
 0x244   : > { %5664 = vmatprep.mubr.msk.bf16.mxu0 %vm287_vm0, %v6780_v54  ;;  %v2667_v17 = vpack.c.bf16 %v2639_v12, %v2638_v10 }
 0x24b   : > { %5665 = vmatmul.mubr.msk.bf16.gmra.mrb[28].mxu0 %vm287_vm0, %v2385_v15 }
 0x24c   : > { %5670 = vmatprep.mubr.msk.bf16.mxu0 %vm287_vm0, %v2664_v29 }
 0x253   : > { %5671 = vmatmul.mubr.msk.bf16.vlgmr.msra.gmra.mrb[0].mxu0 %vm287_vm0, %v2665_v46 }
 0x254   : > { %5703 = vmatpush3.bf16.msra.mxu0 %v3025_v61  ;;  %5674 = vmatprep.mubr.msk.bf16.mxu0 %vm287_vm0, %v2666_v62 }
 0x25b   : > { %5675 = vmatmul.mubr.msk.bf16.gmra.mrb[4].mxu0 %vm287_vm0, %v2667_v17 }
 0x25c   : > { %5678 = vmatprep.mubr.msk.bf16.mxu0 %vm287_vm0, %v2668_v28 }
 0x263   : > { %5679 = vmatmul.mubr.msk.bf16.gmra.mrb[8].mxu0 %vm287_vm0, %v2669_v33 }
 0x264   : > { %5682 = vmatprep.mubr.msk.bf16.mxu0 %vm287_vm0, %v6540_v63  ;;  %v2662_v63 = vld [vmem:[#allocation2 + $0x199] sm:$0xff] }
 0x26b   : > { %5683 = vmatmul.mubr.msk.bf16.gmra.mrb[12].mxu0 %vm287_vm0, %v6552_v14  ;;  %v2663_v14 = vld [vmem:[#allocation2 + $0x1a1] sm:$0xff] }
 0x26c   : > { %5686 = vmatprep.mubr.msk.bf16.mxu0 %vm287_vm0, %v6560_v22  ;;  %v2679_v22 = vpack.c.bf16 %v2663_v14, %v2662_v63 }
 0x273   : > { %5687 = vmatmul.mubr.msk.bf16.gmra.mrb[16].mxu0 %vm287_vm0, %v6572_v34  ;;  %v2956_v34 = vld [vmem:[#allocation2 + $0x19a] sm:$0xff] }
 0x274   : > { %5690 = vmatprep.mubr.msk.bf16.mxu0 %vm287_vm0, %v6580_v42  ;;  %v2957_v42 = vld [vmem:[#allocation2 + $0x1a2] sm:$0xff] }
 0x27b   : > { %5691 = vmatmul.mubr.msk.bf16.gmra.mrb[20].mxu0 %vm287_vm0, %v6590_v50  ;;  %v2973_v50 = vpack.c.bf16 %v2957_v42, %v2956_v34 }
 0x27c   : > { %5694 = vmatprep.mubr.msk.bf16.mxu0 %vm287_vm0, %v6592_v53  ;;  %v7041_v53 = vld [vmem:[%s280_s29] ss:$0 sm:$0xff] }
 0x283   : > { %5695 = vmatmul.mubr.msk.bf16.gmra.mrb[24].mxu0 %vm287_vm0, %v6598_v59 }
 0x284   : > { %5698 = vmatprep.mubr.msk.bf16.mxu0 %vm287_vm0, %v6819_v20 }
 0x28b   : > { %5699 = vmatmul.mubr.msk.bf16.gmra.mrb[28].mxu0 %vm287_vm0, %v2679_v22 }
 0x28c   : > { %5704 = vmatprep.mubr.msk.bf16.mxu0 %vm287_vm0, %v6683_v25  ;;  %v7046_v25 = vld [vmem:[%s7641_s4 + $0x2] sm:$0x3] }
 0x28d   : > { %5284 = vmatprep.mubr.msk.bf16.mxu1 %vm333_vm5, %v7046_v25 }
 0x293   : > { %5705 = vmatmul.mubr.msk.bf16.vlgmr.msra.gmra.mrb[0].mxu0 %vm287_vm0, %v6693_v9 }
 0x294   : > { %5708 = vmatprep.mubr.msk.bf16.mxu0 %vm287_vm0, %v6695_v35 }
 0x29b   : > { %5709 = vmatmul.mubr.msk.bf16.gmra.mrb[4].mxu0 %vm287_vm0, %v6701_v47 }
 0x29c   : > { %5712 = vmatprep.mubr.msk.bf16.mxu0 %vm287_vm0, %v6703_v48 }
 0x2a3   : > { %5713 = vmatmul.mubr.msk.bf16.gmra.mrb[8].mxu0 %vm287_vm0, %v6709_v55 }
 0x2a4   : > { %5716 = vmatprep.mubr.msk.bf16.mxu0 %vm287_vm0, %v6711_v57 }
 0x2ab   : > { %5717 = vmatmul.mubr.msk.bf16.gmra.mrb[12].mxu0 %vm287_vm0, %v6717_v6 }
 0x2ac   : > { %5720 = vmatprep.mubr.msk.bf16.mxu0 %vm287_vm0, %v6719_v11 }
 0x2b3   : > { %5721 = vmatmul.mubr.msk.bf16.gmra.mrb[16].mxu0 %vm287_vm0, %v6725_v18 }
 0x2b4   : > { %5724 = vmatprep.mubr.msk.bf16.mxu0 %vm287_vm0, %v6727_v24 }
 0x2bb   : > { %5725 = vmatmul.mubr.msk.bf16.gmra.mrb[20].mxu0 %vm287_vm0, %v6733_v39 }
 0x2bc   : > { %5728 = vmatprep.mubr.msk.bf16.mxu0 %vm287_vm0, %v6735_v40 }
 0x2c3   : > { %5729 = vmatmul.mubr.msk.bf16.gmra.mrb[24].mxu0 %vm287_vm0, %v6741_v49 }
 0x2c4   : > { %5732 = vmatprep.mubr.msk.bf16.mxu0 %vm287_vm0, %v6858_v19 }
 0x2cb   : > { %5733 = vmatmul.mubr.msk.bf16.gmra.mrb[28].mxu0 %vm287_vm0, %v2973_v50 }
 0x366   : > { %v5706_v59 = vpop.f32.mrb[0].mxu0 }
 0x367   : > { %v7049_v9 = vadd.f32 %v5706_v59, %v7041_v53  ;;  %v3061_v35 = vpop.f32.mrb[1].mxu0 }
 0x368   : > { %v7054_v2 = vadd.f32 %v7041_v53, %v3061_v35  ;;  %v5707_v47 = vpop.f32.mrb[2].mxu0 }
 0x369   : > { %v5063_v48 = vmul.f32 -1.442695, %v7049_v9  ;;  %v7058_v55 = vadd.f32 %v5707_v47, %v7041_v53  ;;  %v3064_v57 = vpop.f32.mrb[3].mxu0 }
 0x36a   : > { %v5061_v6 = vmul.f32 -1.442695, %v7054_v2  ;;  %v7062_v11 = vadd.f32 %v7041_v53, %v3064_v57 }
 0x36b   : > { %6085 = vpow2.f32 %v5063_v48  ;;  %v5064_v18 = vmul.f32 -1.442695, %v7058_v55 }
 0x36c   : > { %6087 = vpow2.f32 %v5061_v6  ;;  %v5062_v24 = vmul.f32 -1.442695, %v7062_v11 }
 0x36d   : > { %6089 = vpow2.f32 %v5064_v18 }
 0x36e   : > { %6091 = vpow2.f32 %v5062_v24  ;;  %v5710_v39 = vpop.f32.mrb[4].mxu0 }
 0x36f   : > { %v7067_v40 = vadd.f32 %v5710_v39, %v7041_v53  ;;  %v3077_v41 = vpop.f32.mrb[5].mxu0 }
 0x370   : > { %v7070_v43 = vadd.f32 %v7041_v53, %v3077_v41  ;;  %v5711_v49 = vpop.f32.mrb[6].mxu0 }
 0x371   : > { %v5067_v51 = vmul.f32 -1.442695, %v7067_v40  ;;  %v7074_v52 = vadd.f32 %v5711_v49, %v7041_v53  ;;  %v3080_v4 = vpop.f32.mrb[7].mxu0 }
 0x372   : > { %v5065_v26 = vmul.f32 -1.442695, %v7070_v43  ;;  %v7078_v54 = vadd.f32 %v7041_v53, %v3080_v4 }
 0x373   : > { %6093 = vpow2.f32 %v5067_v51  ;;  %v5068_v58 = vmul.f32 -1.442695, %v7074_v52 }
 0x374   : > { %6095 = vpow2.f32 %v5065_v26  ;;  %v5066_v60 = vmul.f32 -1.442695, %v7078_v54 }
 0x375   : > { %v6086_v5 = vpop.eup %6085  ;;  %6097 = vpow2.f32 %v5068_v58 }
 0x376   : > { %v6088_v7 = vpop.eup %6087  ;;  %v3357_v20 = vadd.f32 1.0, %v6086_v5  ;;  %6099 = vpow2.f32 %v5066_v60  ;;  %v5714_v27 = vpop.f32.mrb[8].mxu0 }
 0x377   : > { %v6090_v38 = vpop.eup %6089  ;;  %v3355_v45 = vadd.f32 1.0, %v6088_v7  ;;  %v7083_v56 = vadd.f32 %v5714_v27, %v7041_v53  ;;  %v3093_v19 = vpop.f32.mrb[9].mxu0 }
 0x378   : > { %v6092_v0 = vpop.eup %6091  ;;  %6101 = vrcp.f32 %v3357_v20  ;;  %v3358_v1 = vadd.f32 1.0, %v6090_v38  ;;  %v7086_v8 = vadd.f32 %v7041_v53, %v3093_v19  ;;  %v5715_v13 = vpop.f32.mrb[10].mxu0 }
 0x379   : > { %6103 = vrcp.f32 %v3355_v45  ;;  %v3356_v15 = vadd.f32 1.0, %v6092_v0  ;;  %v5071_v21 = vmul.f32 -1.442695, %v7083_v56  ;;  %v7090_v23 = vadd.f32 %v5715_v13, %v7041_v53  ;;  %v3096_v29 = vpop.f32.mrb[11].mxu0 }
 0x37a   : > { %6105 = vrcp.f32 %v3358_v1  ;;  %v5069_v30 = vmul.f32 -1.442695, %v7086_v8  ;;  %v7094_v36 = vadd.f32 %v7041_v53, %v3096_v29 }
 0x37b   : > { %6107 = vrcp.f32 %v3356_v15  ;;  %v5072_v37 = vmul.f32 -1.442695, %v7090_v23 }
 0x37c   : > { %6109 = vpow2.f32 %v5071_v21  ;;  %v5070_v44 = vmul.f32 -1.442695, %v7094_v36 }
 0x37d   : > { %v6094_v46 = vpop.eup %6093  ;;  %6111 = vpow2.f32 %v5069_v30 }
 0x37e   : > { %v6096_v61 = vpop.eup %6095  ;;  %v3361_v62 = vadd.f32 1.0, %v6094_v46  ;;  %6113 = vpow2.f32 %v5072_v37  ;;  %v5718_v10 = vpop.f32.mrb[12].mxu0 }
 0x37f   : > { %v6098_v12 = vpop.eup %6097  ;;  %v3359_v3 = vadd.f32 1.0, %v6096_v61  ;;  %6115 = vpow2.f32 %v5070_v44  ;;  %v7099_v16 = vadd.f32 %v5718_v10, %v7041_v53  ;;  %v3109_v17 = vpop.f32.mrb[13].mxu0 }
 0x380   : > { %v6100_v28 = vpop.eup %6099  ;;  %6117 = vrcp.f32 %v3361_v62  ;;  %v3362_v31 = vadd.f32 1.0, %v6098_v12  ;;  %v7102_v32 = vadd.f32 %v7041_v53, %v3109_v17  ;;  %v5719_v33 = vpop.f32.mrb[14].mxu0 }
 0x381   : > { %6119 = vrcp.f32 %v3359_v3  ;;  %v3360_v63 = vadd.f32 1.0, %v6100_v28  ;;  %v5075_v14 = vmul.f32 -1.442695, %v7099_v16  ;;  %v7106_v22 = vadd.f32 %v5719_v33, %v7041_v53  ;;  %v3112_v34 = vpop.f32.mrb[15].mxu0 }
 0x382   : > { %v6102_v42 = vpop.eup %6101  ;;  %6121 = vrcp.f32 %v3362_v31  ;;  %v5073_v50 = vmul.f32 -1.442695, %v7102_v32  ;;  %v7110_v59 = vadd.f32 %v7041_v53, %v3112_v34 }
 0x383   : > { %v6104_v35 = vpop.eup %6103  ;;  %v3453_v47 = vmul.f32 %v6102_v42, %v7049_v9  ;;  %6123 = vrcp.f32 %v3360_v63  ;;  %v5076_v48 = vmul.f32 -1.442695, %v7106_v22 }
 0x384   : > { %v6106_v57 = vpop.eup %6105  ;;  %v3451_v6 = vmul.f32 %v6104_v35, %v7054_v2  ;;  %6125 = vpow2.f32 %v5075_v14  ;;  %v5074_v18 = vmul.f32 -1.442695, %v7110_v59 }
 0x385   : > { %v6108_v24 = vpop.eup %6107  ;;  %3486 = vst.msk [vmem:[#allocation3 + $0x31] sm:$0xff] %vm333_vm5, %v3453_v47  ;;  %v3454_v39 = vmul.f32 %v6106_v57, %v7058_v55  ;;  %6127 = vpow2.f32 %v5073_v50 }
 0x386   : > { %v6110_v41 = vpop.eup %6109  ;;  %3484 = vst.msk [vmem:[#allocation3 + $0x19] sm:$0xff] %vm333_vm5, %v3451_v6  ;;  %v3452_v9 = vmul.f32 %v6108_v24, %v7062_v11  ;;  %6129 = vpow2.f32 %v5076_v48  ;;  %v5722_v49 = vpop.f32.mrb[16].mxu0 }
 0x387   : > { %v6112_v51 = vpop.eup %6111  ;;  %3487 = vst.msk [vmem:[#allocation3 + $0x39] sm:$0xff] %vm333_vm5, %v3454_v39  ;;  %v3365_v2 = vadd.f32 1.0, %v6110_v41  ;;  %6131 = vpow2.f32 %v5074_v18  ;;  %v7122_v4 = vadd.f32 %v5722_v49, %v7041_v53  ;;  %v3125_v26 = vpop.f32.mrb[17].mxu0 }
 0x388   : > { %v6114_v58 = vpop.eup %6113  ;;  %3485 = vst.msk [vmem:[#allocation3 + $0x21] sm:$0xff] %vm333_vm5, %v3452_v9  ;;  %v3363_v55 = vadd.f32 1.0, %v6112_v51  ;;  %v7126_v60 = vadd.f32 %v7041_v53, %v3125_v26  ;;  %v5723_v5 = vpop.f32.mrb[18].mxu0 }
 0x389   : > { %v6116_v11 = vpop.eup %6115  ;;  %6133 = vrcp.f32 %v3365_v2  ;;  %v3366_v7 = vadd.f32 1.0, %v6114_v58  ;;  %v5079_v20 = vmul.f32 -1.442695, %v7122_v4  ;;  %v7130_v27 = vadd.f32 %v5723_v5, %v7041_v53  ;;  %v3128_v38 = vpop.f32.mrb[19].mxu0 }
 0x38a   : > { %v6118_v45 = vpop.eup %6117  ;;  %6135 = vrcp.f32 %v3363_v55  ;;  %v3364_v19 = vadd.f32 1.0, %v6116_v11  ;;  %v5077_v0 = vmul.f32 -1.442695, %v7126_v60  ;;  %v7134_v1 = vadd.f32 %v7041_v53, %v3128_v38 }
 0x38b   : > { %v6120_v13 = vpop.eup %6119  ;;  %v3457_v15 = vmul.f32 %v6118_v45, %v7067_v40  ;;  %6137 = vrcp.f32 %v3366_v7  ;;  %v5080_v21 = vmul.f32 -1.442695, %v7130_v27 }
 0x38c   : > { %v6122_v29 = vpop.eup %6121  ;;  %v3455_v30 = vmul.f32 %v6120_v13, %v7070_v43  ;;  %6139 = vrcp.f32 %v3364_v19  ;;  %v5078_v37 = vmul.f32 -1.442695, %v7134_v1 }
 0x38d   : > { %v6124_v44 = vpop.eup %6123  ;;  %3490 = vst.msk [vmem:[#allocation3 + $0x61] sm:$0xff] %vm333_vm5, %v3457_v15  ;;  %v3458_v46 = vmul.f32 %v6122_v29, %v7074_v52  ;;  %6141 = vpow2.f32 %v5079_v20 }
 0x38e   : > { %v6126_v61 = vpop.eup %6125  ;;  %3488 = vst.msk [vmem:[#allocation3 + $0x49] sm:$0xff] %vm333_vm5, %v3455_v30  ;;  %v3456_v40 = vmul.f32 %v6124_v44, %v7078_v54  ;;  %6143 = vpow2.f32 %v5077_v0  ;;  %v5726_v62 = vpop.f32.mrb[20].mxu0 }
 0x38f   : > { %v6128_v10 = vpop.eup %6127  ;;  %3491 = vst.msk [vmem:[#allocation3 + $0x69] sm:$0xff] %vm333_vm5, %v3458_v46  ;;  %v3369_v43 = vadd.f32 1.0, %v6126_v61  ;;  %6145 = vpow2.f32 %v5080_v21  ;;  %v7146_v12 = vadd.f32 %v5726_v62, %v7041_v53  ;;  %v3141_v3 = vpop.f32.mrb[21].mxu0 }
 0x390   : > { %v6130_v17 = vpop.eup %6129  ;;  %3489 = vst.msk [vmem:[#allocation3 + $0x51] sm:$0xff] %vm333_vm5, %v3456_v40  ;;  %v3367_v52 = vadd.f32 1.0, %v6128_v10  ;;  %6147 = vpow2.f32 %v5078_v37  ;;  %v7150_v28 = vadd.f32 %v7041_v53, %v3141_v3  ;;  %v5727_v54 = vpop.f32.mrb[22].mxu0 }
 0x391   : > { %v6132_v31 = vpop.eup %6131  ;;  %6149 = vrcp.f32 %v3369_v43  ;;  %v3370_v33 = vadd.f32 1.0, %v6130_v17  ;;  %v5083_v63 = vmul.f32 -1.442695, %v7146_v12  ;;  %v7154_v14 = vadd.f32 %v5727_v54, %v7041_v53  ;;  %v3144_v34 = vpop.f32.mrb[23].mxu0 }
 0x392   : > { %6151 = vrcp.f32 %v3367_v52  ;;  %v3368_v42 = vadd.f32 1.0, %v6132_v31  ;;  %v5081_v50 = vmul.f32 -1.442695, %v7150_v28  ;;  %v7158_v35 = vadd.f32 %v7041_v53, %v3144_v34  ;;  %v3566_v34 = vld [vmem:[#allocation3 + $0x9] sm:$0xff] }
 0x393   : > { %v6134_v47 = vpop.eup %6133  ;;  %6153 = vrcp.f32 %v3370_v33  ;;  %v5084_v48 = vmul.f32 -1.442695, %v7154_v14 }
 0x394   : > { %v6136_v57 = vpop.eup %6135  ;;  %v3461_v6 = vmul.f32 %v6134_v47, %v7083_v56  ;;  %6155 = vrcp.f32 %v3368_v42  ;;  %v5082_v18 = vmul.f32 -1.442695, %v7158_v35 }
 0x395   : > { %v6138_v24 = vpop.eup %6137  ;;  %v3459_v39 = vmul.f32 %v6136_v57, %v7086_v8  ;;  %6157 = vpow2.f32 %v5083_v63  ;;  %v3565_v63 = vld [vmem:[#allocation3 + $0x1] sm:$0xff] }
 0x396   : > { %v6140_v41 = vpop.eup %6139  ;;  %3494 = vst.msk [vmem:[#allocation3 + $0x91] sm:$0xff] %vm333_vm5, %v3461_v6  ;;  %v3462_v9 = vmul.f32 %v6138_v24, %v7090_v23  ;;  %6159 = vpow2.f32 %v5081_v50  ;;  %v5730_v49 = vpop.f32.mrb[24].mxu0 }
 0x397   : > { %v6142_v51 = vpop.eup %6141  ;;  %3492 = vst.msk [vmem:[#allocation3 + $0x79] sm:$0xff] %vm333_vm5, %v3459_v39  ;;  %v3460_v2 = vmul.f32 %v6140_v41, %v7094_v36  ;;  %6161 = vpow2.f32 %v5084_v48  ;;  %v7169_v56 = vadd.f32 %v5730_v49, %v7041_v53  ;;  %v3157_v26 = vpop.f32.mrb[25].mxu0  ;;  %v3599_v39 = vpack.c.bf16 %v3566_v34, %v3565_v63 }
 0x398   : > { %v6144_v58 = vpop.eup %6143  ;;  %3495 = vst.msk [vmem:[#allocation3 + $0x99] sm:$0xff] %vm333_vm5, %v3462_v9  ;;  %v3373_v8 = vadd.f32 1.0, %v6142_v51  ;;  %6163 = vpow2.f32 %v5082_v18  ;;  %v7173_v55 = vadd.f32 %v7041_v53, %v3157_v26  ;;  %v5731_v23 = vpop.f32.mrb[26].mxu0 }
 0x399   : > { %v6146_v5 = vpop.eup %6145  ;;  %3493 = vst.msk [vmem:[#allocation3 + $0x81] sm:$0xff] %vm333_vm5, %v3460_v2  ;;  %v3371_v11 = vadd.f32 1.0, %v6144_v58  ;;  %v7177_v36 = vadd.f32 %v5731_v23, %v7041_v53  ;;  %v3160_v7 = vpop.f32.mrb[27].mxu0  ;;  %v5087_v45 = vmul.f32 -1.442695, %v7169_v56 }
 0x39a   : > { %v6148_v20 = vpop.eup %6147  ;;  %6165 = vrcp.f32 %v3373_v8  ;;  %v3374_v38 = vadd.f32 1.0, %v6146_v5  ;;  %v7181_v19 = vadd.f32 %v7041_v53, %v3160_v7  ;;  %v5085_v15 = vmul.f32 -1.442695, %v7173_v55 }
 0x39b   : > { %v6150_v0 = vpop.eup %6149  ;;  %6167 = vrcp.f32 %v3371_v11  ;;  %v3372_v13 = vadd.f32 1.0, %v6148_v20  ;;  %v5088_v30 = vmul.f32 -1.442695, %v7177_v36  ;;  %v3619_v11 = vsel %vm333_vm5, %v3599_v39, 0 }
 0x39c   : > { %v6152_v21 = vpop.eup %6151  ;;  %v3465_v29 = vmul.f32 %v6150_v0, %v7099_v16  ;;  %6169 = vrcp.f32 %v3374_v38  ;;  %v5086_v46 = vmul.f32 -1.442695, %v7181_v19 }
 0x39d   : > { %v6154_v37 = vpop.eup %6153  ;;  %v3463_v44 = vmul.f32 %v6152_v21, %v7102_v32  ;;  %6171 = vrcp.f32 %v3372_v13  ;;  %v3568_v21 = vld [vmem:[#allocation3 + $0x21] sm:$0xff] }
 0x39e   : > { %v6156_v61 = vpop.eup %6155  ;;  %3498 = vst.msk [vmem:[#allocation3 + $0xc1] sm:$0xff] %vm333_vm5, %v3465_v29  ;;  %v3466_v40 = vmul.f32 %v6154_v37, %v7106_v22  ;;  %6173 = vpow2.f32 %v5087_v45  ;;  %v5734_v62 = vpop.f32.mrb[28].mxu0 }
 0x39f   : > { %v6158_v10 = vpop.eup %6157  ;;  %3496 = vst.msk [vmem:[#allocation3 + $0xa9] sm:$0xff] %vm333_vm5, %v3463_v44  ;;  %v3464_v16 = vmul.f32 %v6156_v61, %v7110_v59  ;;  %6175 = vpow2.f32 %v5085_v15  ;;  %v7193_v43 = vadd.f32 %v5734_v62, %v7041_v53  ;;  %v3173_v32 = vpop.f32.mrb[29].mxu0 }
 0x3a0   : > { %v6160_v3 = vpop.eup %6159  ;;  %3499 = vst.msk [vmem:[#allocation3 + $0xc9] sm:$0xff] %vm333_vm5, %v3466_v40  ;;  %v3377_v17 = vadd.f32 1.0, %v6158_v10  ;;  %6177 = vpow2.f32 %v5088_v30  ;;  %v7197_v52 = vadd.f32 %v7041_v53, %v3173_v32  ;;  %v5735_v22 = vpop.f32.mrb[30].mxu0 }
 0x3a1   : > { %v6162_v54 = vpop.eup %6161  ;;  %3497 = vst.msk [vmem:[#allocation3 + $0xb1] sm:$0xff] %vm333_vm5, %v3464_v16  ;;  %v3375_v31 = vadd.f32 1.0, %v6160_v3  ;;  %6179 = vpow2.f32 %v5086_v46  ;;  %v7201_v59 = vadd.f32 %v5735_v22, %v7041_v53  ;;  %v3176_v33 = vpop.f32.mrb[31].mxu0  ;;  %v5091_v47 = vmul.f32 -1.442695, %v7193_v43  ;;  %v3567_v46 = vld [vmem:[#allocation3 + $0x19] sm:$0xff] }
 0x3a2   : > { %v6164_v42 = vpop.eup %6163  ;;  %6181 = vrcp.f32 %v3377_v17  ;;  %v3378_v50 = vadd.f32 1.0, %v6162_v54  ;;  %v7205_v48 = vadd.f32 %v7041_v53, %v3176_v33  ;;  %v5089_v6 = vmul.f32 -1.442695, %v7197_v52 }
 0x3a3   : > { %6183 = vrcp.f32 %v3375_v31  ;;  %v3376_v57 = vadd.f32 1.0, %v6164_v42  ;;  %v5092_v24 = vmul.f32 -1.442695, %v7201_v59  ;;  %v3600_v62 = vpack.c.bf16 %v3568_v21, %v3567_v46  ;;  %v3570_v42 = vld [vmem:[#allocation3 + $0x39] sm:$0xff] }
 0x3a4   : > { %v6166_v18 = vpop.eup %6165  ;;  %6185 = vrcp.f32 %v3378_v50  ;;  %v5090_v49 = vmul.f32 -1.442695, %v7205_v48  ;;  %v3578_v46 = vld [vmem:[#allocation3 + $0x99] sm:$0xff] }
 0x3a5   : > { %v6168_v41 = vpop.eup %6167  ;;  %v3469_v9 = vmul.f32 %v6166_v18, %v7122_v4  ;;  %6187 = vrcp.f32 %v3376_v57  ;;  %v3581_v58 = vld [vmem:[#allocation3 + $0xc1] sm:$0xff]  ;;  %v7236_v33 = vsel %vm333_vm5, %v3600_v62, 0  ;;  %v3569_v18 = vld [vmem:[#allocation3 + $0x31] sm:$0xff] }
 0x3a6   : > { %v6170_v51 = vpop.eup %6169  ;;  %v3467_v2 = vmul.f32 %v6168_v41, %v7126_v60  ;;  %6189 = vpow2.f32 %v5091_v47  ;;  %v3601_v41 = vpack.c.bf16 %v3570_v42, %v3569_v18 }
 0x3a7   : > { %v6172_v53 = vpop.eup %6171  ;;  %3502 = vst.msk [vmem:[#allocation3 + $0xf1] sm:$0xff] %vm333_vm5, %v3469_v9  ;;  %v3470_v26 = vmul.f32 %v6170_v51, %v7130_v27  ;;  %6191 = vpow2.f32 %v5089_v6  ;;  %v3582_v8 = vld [vmem:[#allocation3 + $0xc9] sm:$0xff] }
 0x3a8   : > { %v6174_v23 = vpop.eup %6173  ;;  %3500 = vst.msk [vmem:[#allocation3 + $0xd9] sm:$0xff] %vm333_vm5, %v3467_v2  ;;  %v3468_v4 = vmul.f32 %v6172_v53, %v7134_v1  ;;  %6193 = vpow2.f32 %v5092_v24  ;;  %v7216_v5 = vpack.c.bf16 %v3582_v8, %v3581_v58  ;;  %v7252_v51 = vsel %vm333_vm5, %v3601_v41, 0  ;;  %v3571_v8 = vld [vmem:[#allocation3 + $0x49] sm:$0xff] }
 0x3a9   : > { %v6176_v60 = vpop.eup %6175  ;;  %3503 = vst.msk [vmem:[#allocation3 + $0xf9] sm:$0xff] %vm333_vm5, %v3470_v26  ;;  %v3381_v7 = vadd.f32 1.0, %v6174_v23  ;;  %6195 = vpow2.f32 %v5090_v49 }
 0x3aa   : > { %v6178_v20 = vpop.eup %6177  ;;  %3501 = vst.msk [vmem:[#allocation3 + $0xe1] sm:$0xff] %vm333_vm5, %v3468_v4  ;;  %v3379_v27 = vadd.f32 1.0, %v6176_v60  ;;  %6001 = vmatprep.subr.msk.bf16.mxu1 %vm333_vm5, %v7216_v5 }
 0x3ab   : > { %v6180_v38 = vpop.eup %6179  ;;  %6197 = vrcp.f32 %v3381_v7  ;;  %v3382_v1 = vadd.f32 1.0, %v6178_v20  ;;  %5269 = vmatpush3.bf16.xpose.msra.mxu1 %v3619_v11 }
 0x3ac   : > { %v6182_v45 = vpop.eup %6181  ;;  %6199 = vrcp.f32 %v3379_v27  ;;  %v3380_v0 = vadd.f32 1.0, %v6180_v38  ;;  %v3574_v27 = vld [vmem:[#allocation3 + $0x69] sm:$0xff] }
 0x3ad   : > { %v6184_v13 = vpop.eup %6183  ;;  %v3473_v15 = vmul.f32 %v6182_v45, %v7146_v12  ;;  %6201 = vrcp.f32 %v3382_v1 }
 0x3ae   : > { %v6186_v29 = vpop.eup %6185  ;;  %v3471_v30 = vmul.f32 %v6184_v13, %v7150_v28  ;;  %6203 = vrcp.f32 %v3380_v0  ;;  %v3585_v31 = vld [vmem:[#allocation3 + $0xf1] sm:$0xff]  ;;  %v3576_v13 = vld [vmem:[#allocation3 + $0x81] sm:$0xff] }
 0x3af   : > { %v6188_v37 = vpop.eup %6187  ;;  %3506 = vst.msk [vmem:[#allocation3 + $0x121] sm:$0xff] %vm333_vm5, %v3473_v15  ;;  %v3474_v44 = vmul.f32 %v6186_v29, %v7154_v14  ;;  %v3583_v16 = vld [vmem:[#allocation3 + $0xd9] sm:$0xff] }
 0x3b0   : > { %v6190_v61 = vpop.eup %6189  ;;  %3504 = vst.msk [vmem:[#allocation3 + $0x109] sm:$0xff] %vm333_vm5, %v3471_v30  ;;  %v3472_v40 = vmul.f32 %v6188_v37, %v7158_v35  ;;  %v3586_v28 = vld [vmem:[#allocation3 + $0xf9] sm:$0xff] }
 0x3b1   : > { %v6192_v10 = vpop.eup %6191  ;;  %3507 = vst.msk [vmem:[#allocation3 + $0x129] sm:$0xff] %vm333_vm5, %v3474_v44  ;;  %v3385_v12 = vadd.f32 1.0, %v6190_v61  ;;  %v3584_v32 = vld [vmem:[#allocation3 + $0xe1] sm:$0xff]  ;;  %v7238_v63 = vpack.c.bf16 %v3586_v28, %v3585_v31  ;;  %v3575_v15 = vld [vmem:[#allocation3 + $0x79] sm:$0xff]  ;;  %v3577_v61 = vld [vmem:[#allocation3 + $0x91] sm:$0xff] }
 0x3b2   : > { %v6194_v3 = vpop.eup %6193  ;;  %3505 = vst.msk [vmem:[#allocation3 + $0x111] sm:$0xff] %vm333_vm5, %v3472_v40  ;;  %v3383_v17 = vadd.f32 1.0, %v6192_v10  ;;  %v7231_v22 = vpack.c.bf16 %v3584_v32, %v3583_v16  ;;  %v3604_v21 = vpack.c.bf16 %v3576_v13, %v3575_v15  ;;  %v3605_v40 = vpack.c.bf16 %v3578_v46, %v3577_v61  ;;  %v3580_v32 = vld [vmem:[#allocation3 + $0xb1] sm:$0xff]  ;;  %v3579_v28 = vld [vmem:[#allocation3 + $0xa9] sm:$0xff] }
 0x3b3   : > { %v6196_v14 = vpop.eup %6195  ;;  %6205 = vrcp.f32 %v3385_v12  ;;  %v3386_v54 = vadd.f32 1.0, %v6194_v3  ;;  %v3606_v3 = vpack.c.bf16 %v3580_v32, %v3579_v28  ;;  %v3517_v31 = vld [vmem:[#allocation3 + $0x8] sm:$0xff]  ;;  %v3529_v32 = vld [vmem:[#allocation3 + $0x98] sm:$0xff]  ;;  %v3528_v28 = vld [vmem:[#allocation3 + $0x90] sm:$0xff] }
 0x3b4   : > { %6207 = vrcp.f32 %v3383_v17  ;;  %v3384_v35 = vadd.f32 1.0, %v6196_v14  ;;  %6002 = vmatprep.subr.msk.bf16.mxu1 %vm333_vm5, %v7231_v22  ;;  %v7284_v37 = vsel %vm333_vm5, %v3604_v21, 0  ;;  %v7292_v12 = vsel %vm333_vm5, %v3605_v40, 0  ;;  %v3533_v17 = vld [vmem:[#allocation3 + $0xc8] sm:$0xff]  ;;  %v3532_v14 = vld [vmem:[#allocation3 + $0xc0] sm:$0xff] }
 0x3b5   : > { %v6198_v34 = vpop.eup %6197  ;;  %6209 = vrcp.f32 %v3386_v54  ;;  %5271 = vmatpush3.bf16.xpose.msra.mxu1 %v7236_v33  ;;  %v3516_v54 = vld [vmem:[#allocation3] sm:$0xff] }
 0x3b6   : > { %v6200_v50 = vpop.eup %6199  ;;  %v3477_v47 = vmul.f32 %v6198_v34, %v7169_v56  ;;  %6211 = vrcp.f32 %v3384_v35  ;;  %6003 = vmatprep.subr.msk.bf16.mxu1 %vm333_vm5, %v7238_v63  ;;  %v7300_v35 = vsel %vm333_vm5, %v3606_v3, 0  ;;  %v7302_v34 = vpack.c.bf16 %v3533_v17, %v3532_v14 }
 0x3b7   : > { %v6202_v57 = vpop.eup %6201  ;;  %v3475_v6 = vmul.f32 %v6200_v50, %v7173_v55  ;;  %v3587_v56 = vld [vmem:[#allocation3 + $0x109] sm:$0xff]  ;;  %v3549_v42 = vpack.c.bf16 %v3517_v31, %v3516_v54  ;;  %v3535_v50 = vld [vmem:[#allocation3 + $0xe0] sm:$0xff]  ;;  %v3555_v3 = vpack.c.bf16 %v3529_v32, %v3528_v28  ;;  %v3806_v32 = vld [vmem:[#allocation3 + $0x52] sm:$0xff] }
 0x3b8   : > { %v6204_v24 = vpop.eup %6203  ;;  %3510 = vst.msk [vmem:[#allocation3 + $0x151] sm:$0xff] %vm333_vm5, %v3477_v47  ;;  %v3478_v39 = vmul.f32 %v6202_v57, %v7177_v36  ;;  %v3572_v36 = vld [vmem:[#allocation3 + $0x51] sm:$0xff]  ;;  %v3590_v7 = vld [vmem:[#allocation3 + $0x129] sm:$0xff] }
 0x3b9   : > { %3508 = vst.msk [vmem:[#allocation3 + $0x139] sm:$0xff] %vm333_vm5, %v3475_v6  ;;  %v3476_v9 = vmul.f32 %v6204_v24, %v7181_v19  ;;  %v3588_v49 = vld [vmem:[#allocation3 + $0x111] sm:$0xff]  ;;  %v3602_v11 = vpack.c.bf16 %v3572_v36, %v3571_v8  ;;  %v3711_v47 = vsel %vm333_vm5, %v3549_v42, 0  ;;  %v3519_v24 = vld [vmem:[#allocation3 + $0x20] sm:$0xff]  ;;  %v7362_v54 = vsel %vm333_vm5, %v3555_v3, 0 }
 0x3ba   : > { %3511 = vst.msk [vmem:[#allocation3 + $0x159] sm:$0xff] %vm333_vm5, %v3478_v39  ;;  %v7254_v55 = vpack.c.bf16 %v3588_v49, %v3587_v56  ;;  %v7311_v57 = vld [vmem:[%s7641_s4] sm:$0x3]  ;;  %v3534_v6 = vld [vmem:[#allocation3 + $0xd8] sm:$0xff]  ;;  %v3823_v3 = vld [vmem:[#allocation3 + $0x122] sm:$0xff] }
 0x3bb   : > { %3509 = vst.msk [vmem:[#allocation3 + $0x141] sm:$0xff] %vm333_vm5, %v3476_v9  ;;  %v7268_v20 = vsel %vm333_vm5, %v3602_v11, 0  ;;  %v7315_v18 = vpack.c.bf16 %v3535_v50, %v3534_v6  ;;  %v3518_v39 = vld [vmem:[#allocation3 + $0x18] sm:$0xff]  ;;  %v3536_v49 = vld [vmem:[#allocation3 + $0xf0] sm:$0xff]  ;;  %v3530_v50 = vld [vmem:[#allocation3 + $0xa8] sm:$0xff] }
 0x3bc   : > { %v3550_v41 = vpack.c.bf16 %v3519_v24, %v3518_v39  ;;  %v3537_v9 = vld [vmem:[#allocation3 + $0xf8] sm:$0xff]  ;;  %v3520_v36 = vld [vmem:[#allocation3 + $0x30] sm:$0xff]  ;;  %v3815_v6 = vld [vmem:[#allocation3 + $0xc2] sm:$0xff] }
 0x3bd   : > { %v6206_v2 = vpop.eup %6205  ;;  %5273 = vmatpush3.bf16.xpose.msra.mxu1 %v7252_v51  ;;  %v3531_v42 = vld [vmem:[#allocation3 + $0xb0] sm:$0xff]  ;;  %v3799_v39 = vld [vmem:[#allocation3 + $0x2] sm:$0xff] }
 0x3be   : > { %v6208_v53 = vpop.eup %6207  ;;  %v3481_v26 = vmul.f32 %v6206_v2, %v7193_v43  ;;  %6004 = vmatprep.subr.msk.bf16.mxu1 %vm333_vm5, %v7254_v55  ;;  %v3589_v43 = vld [vmem:[#allocation3 + $0x121] sm:$0xff]  ;;  %v7322_v56 = vsel %vm333_vm5, %v3550_v41, 0  ;;  %v7324_v2 = vpack.c.bf16 %v3537_v9, %v3536_v49  ;;  %v3816_v24 = vld [vmem:[#allocation3 + $0xca] sm:$0xff] }
 0x3bf   : > { %v6210_v19 = vpop.eup %6209  ;;  %v3479_v58 = vmul.f32 %v6208_v53, %v7197_v52  ;;  %v7270_v52 = vpack.c.bf16 %v3590_v7, %v3589_v43  ;;  %v3593_v30 = vld [vmem:[#allocation3 + $0x151] sm:$0xff]  ;;  %v3540_v7 = vld [vmem:[#allocation3 + $0x120] sm:$0xff]  ;;  %v7372_v49 = vpack.c.bf16 %v3816_v24, %v3815_v6 }
 0x3c0   : > { %v6212_v23 = vpop.eup %6211  ;;  %3514 = vst.msk [vmem:[#allocation3 + $0x181] sm:$0xff] %vm333_vm5, %v3481_v26  ;;  %v3482_v4 = vmul.f32 %v6210_v19, %v7201_v59  ;;  %v3573_v59 = vld [vmem:[#allocation3 + $0x61] sm:$0xff]  ;;  %v3591_v1 = vld [vmem:[#allocation3 + $0x139] sm:$0xff]  ;;  %v3539_v26 = vld [vmem:[#allocation3 + $0x110] sm:$0xff] }
 0x3c1   : > { %3512 = vst.msk [vmem:[#allocation3 + $0x169] sm:$0xff] %vm333_vm5, %v3479_v58  ;;  %v3480_v60 = vmul.f32 %v6212_v23, %v7205_v48  ;;  %v3603_v38 = vpack.c.bf16 %v3574_v27, %v3573_v59  ;;  %v3594_v29 = vld [vmem:[#allocation3 + $0x159] sm:$0xff]  ;;  %v3538_v19 = vld [vmem:[#allocation3 + $0x108] sm:$0xff]  ;;  %v3523_v23 = vld [vmem:[#allocation3 + $0x50] sm:$0xff] }
 0x3c2   : > { %3515 = vst.msk [vmem:[#allocation3 + $0x189] sm:$0xff] %vm333_vm5, %v3482_v4  ;;  %v3592_v48 = vld [vmem:[#allocation3 + $0x141] sm:$0xff]  ;;  %v7286_v44 = vpack.c.bf16 %v3594_v29, %v3593_v30  ;;  %v7332_v8 = vpack.c.bf16 %v3539_v26, %v3538_v19  ;;  %v3542_v13 = vld [vmem:[#allocation3 + $0x138] sm:$0xff]  ;;  %v3544_v40 = vld [vmem:[#allocation3 + $0x150] sm:$0xff] }
 0x3c3   : > { %3513 = vst.msk [vmem:[#allocation3 + $0x171] sm:$0xff] %vm333_vm5, %v3480_v60  ;;  %v7276_v45 = vsel %vm333_vm5, %v3603_v38, 0  ;;  %v7278_v0 = vpack.c.bf16 %v3592_v48, %v3591_v1  ;;  %v3522_v4 = vld [vmem:[#allocation3 + $0x48] sm:$0xff]  ;;  %v3524_v38 = vld [vmem:[#allocation3 + $0x60] sm:$0xff]  ;;  %v3526_v30 = vld [vmem:[#allocation3 + $0x78] sm:$0xff] }
 0x3c4   : > { %v3552_v11 = vpack.c.bf16 %v3523_v23, %v3522_v4  ;;  %v3541_v60 = vld [vmem:[#allocation3 + $0x128] sm:$0xff]  ;;  %v3543_v1 = vld [vmem:[#allocation3 + $0x140] sm:$0xff]  ;;  %v3545_v61 = vld [vmem:[#allocation3 + $0x158] sm:$0xff] }
 0x3c5   : > { %5275 = vmatpush3.bf16.xpose.msra.mxu1 %v7268_v20  ;;  %v7340_v27 = vpack.c.bf16 %v3541_v60, %v3540_v7  ;;  %v3525_v59 = vld [vmem:[#allocation3 + $0x68] sm:$0xff]  ;;  %v7348_v21 = vpack.c.bf16 %v3543_v1, %v3542_v13  ;;  %v3527_v29 = vld [vmem:[#allocation3 + $0x80] sm:$0xff]  ;;  %v7381_v19 = vld [vmem:[%s7641_s4 + $0x4] sm:$0x3] }
 0x3c6   : > { %6005 = vmatprep.subr.msk.bf16.mxu1 %vm333_vm5, %v7270_v52  ;;  %v7338_v43 = vsel %vm333_vm5, %v3552_v11, 0  ;;  %v3553_v48 = vpack.c.bf16 %v3525_v59, %v3524_v38  ;;  %v3554_v46 = vpack.c.bf16 %v3527_v29, %v3526_v30  ;;  %v3800_v41 = vld [vmem:[#allocation3 + $0xa] sm:$0xff]  ;;  %v3801_v4 = vld [vmem:[#allocation3 + $0x1a] sm:$0xff]  ;;  %v3802_v11 = vld [vmem:[#allocation3 + $0x22] sm:$0xff] }
 0x3c7   : > { %v3834_v60 = vpack.c.bf16 %v3802_v11, %v3801_v4  ;;  %v3819_v7 = vld [vmem:[#allocation3 + $0xf2] sm:$0xff]  ;;  %v3820_v59 = vld [vmem:[#allocation3 + $0xfa] sm:$0xff]  ;;  %v3821_v29 = vld [vmem:[#allocation3 + $0x10a] sm:$0xff] }
 0x3c8   : > { %v3595_v10 = vld [vmem:[#allocation3 + $0x169] sm:$0xff]  ;;  %v7346_v15 = vsel %vm333_vm5, %v3553_v48, 0  ;;  %v7394_v48 = vpack.c.bf16 %v3820_v59, %v3819_v7  ;;  %v3804_v1 = vld [vmem:[#allocation3 + $0x3a] sm:$0xff]  ;;  %v3822_v30 = vld [vmem:[#allocation3 + $0x112] sm:$0xff] }
 0x3c9   : > { %v3546_v14 = vld [vmem:[#allocation3 + $0x168] sm:$0xff]  ;;  %v7392_v38 = vsel %vm333_vm5, %v3834_v60, 0  ;;  %v3825_v24 = vld [vmem:[#allocation3 + $0x13a] sm:$0xff]  ;;  %v3827_v4 = vld [vmem:[#allocation3 + $0x152] sm:$0xff] }
 0x3ca   : > { %v3596_v62 = vld [vmem:[#allocation3 + $0x171] sm:$0xff]  ;;  %v3828_v11 = vld [vmem:[#allocation3 + $0x15a] sm:$0xff] }
 0x3cb   : > { %v7294_v16 = vpack.c.bf16 %v3596_v62, %v3595_v10  ;;  %v7354_v62 = vsel %vm333_vm5, %v3554_v46, 0  ;;  %v7356_v10 = vpack.c.bf16 %v3545_v61, %v3544_v40  ;;  %v3547_v17 = vld [vmem:[#allocation3 + $0x170] sm:$0xff]  ;;  %v7402_v61 = vpack.c.bf16 %v3822_v30, %v3821_v29 }
 0x3cc   : > { %v7364_v31 = vpack.c.bf16 %v3547_v17, %v3546_v14  ;;  %v3805_v40 = vld [vmem:[#allocation3 + $0x4a] sm:$0xff]  ;;  %v7426_v7 = vpack.c.bf16 %v3828_v11, %v3827_v4  ;;  %v3811_v59 = vld [vmem:[#allocation3 + $0x92] sm:$0xff] }
 0x3cd   : > { %5277 = vmatpush3.bf16.xpose.msra.mxu1 %v7276_v45  ;;  %v3836_v28 = vpack.c.bf16 %v3806_v32, %v3805_v40  ;;  %v3824_v17 = vld [vmem:[#allocation3 + $0x12a] sm:$0xff]  ;;  %v3830_v29 = vld [vmem:[#allocation3 + $0x172] sm:$0xff] }
 0x3ce   : > { %6006 = vmatprep.subr.msk.bf16.mxu1 %vm333_vm5, %v7278_v0  ;;  %v3813_v32 = vld [vmem:[#allocation3 + $0xaa] sm:$0xff] }
 0x3cf   : > { %v7408_v14 = vsel %vm333_vm5, %v3836_v28, 0  ;;  %v3814_v28 = vld [vmem:[#allocation3 + $0xb2] sm:$0xff] }
 0x3d0   : > { %v4539_v11 = vld [vmem:[#allocation3 + $0x111] sm:$0xff] }
 0x3d5   : > { %5279 = vmatpush3.bf16.xpose.msra.mxu1 %v7284_v37 }
 0x3d6   : > { %6007 = vmatprep.subr.msk.bf16.mxu1 %vm333_vm5, %v7286_v44 }
 0x3dd   : > { %5281 = vmatpush3.bf16.xpose.msra.mxu1 %v7292_v12 }
 0x3de   : > { %6008 = vmatprep.subr.msk.bf16.mxu1 %vm333_vm5, %v7294_v16 }
 0x3e5   : > { %5283 = vmatpush3.bf16.xpose.msra.mxu1 %v7300_v35 }
 0x3e6   : > { %6009 = vmatprep.subr.msk.bf16.mxu1 %vm333_vm5, %v7302_v34 }
 0x3ec   : > { %5285 = vmatmul.mubr.msk.bf16.vlgmr.msra.gmra.mrb[0].mxu1 %vm333_vm5, %v7046_v25  ;;  %v3521_v25 = vld [vmem:[#allocation3 + $0x38] sm:$0xff] }
 0x3ed   : > { %5287 = vmatpush3.bf16.xpose.msra.mxu1 %v3711_v47  ;;  %5302 = vmatprep.mubr.msk.bf16.mxu1 %vm333_vm5, %v7311_v57  ;;  %v3551_v53 = vpack.c.bf16 %v3521_v25, %v3520_v36  ;;  %v3556_v47 = vpack.c.bf16 %v3531_v42, %v3530_v50  ;;  %v3833_v25 = vpack.c.bf16 %v3800_v41, %v3799_v39  ;;  %v3817_v36 = vld [vmem:[#allocation3 + $0xda] sm:$0xff]  ;;  %v3807_v50 = vld [vmem:[#allocation3 + $0x62] sm:$0xff] }
 0x3ee   : > { %6010 = vmatprep.subr.msk.bf16.mxu1 %vm333_vm5, %v7315_v18  ;;  %v7410_v42 = vpack.c.bf16 %v3824_v17, %v3823_v3  ;;  %v3826_v39 = vld [vmem:[#allocation3 + $0x142] sm:$0xff]  ;;  %v3840_v3 = vpack.c.bf16 %v3814_v28, %v3813_v32 }
 0x3ef   : > { %v7330_v58 = vsel %vm333_vm5, %v3551_v53, 0  ;;  %v7370_v9 = vsel %vm333_vm5, %v3556_v47, 0  ;;  %v3818_v53 = vld [vmem:[#allocation3 + $0xe2] sm:$0xff]  ;;  %v3853_v26 = vsel %vm333_vm5, %v3833_v25, 0  ;;  %v3808_v47 = vld [vmem:[#allocation3 + $0x6a] sm:$0xff]  ;;  %v7418_v25 = vpack.c.bf16 %v3826_v39, %v3825_v24 }
 0x3f0   : > { %v7385_v23 = vpack.c.bf16 %v3818_v53, %v3817_v36  ;;  %v3837_v6 = vpack.c.bf16 %v3808_v47, %v3807_v50  ;;  %v3809_v36 = vld [vmem:[#allocation3 + $0x7a] sm:$0xff]  ;;  %v3810_v53 = vld [vmem:[#allocation3 + $0x82] sm:$0xff]  ;;  %v7440_v17 = vsel %vm333_vm5, %v3840_v3, 0  ;;  %v5098_v50 = vld [vmem:[%s7641_s4 + $0x6] sm:$0x3] }
 0x3f1   : > { %v5100_v24 = vld [vmem:[%s7641_s4 + $0x8] sm:$0x3]  ;;  %v4541_v28 = vld [vmem:[#allocation3 + $0x129] sm:$0xff]  ;;  %v4540_v3 = vld [vmem:[#allocation3 + $0x121] sm:$0xff] }
 0x3f2   : > { %v7416_v41 = vsel %vm333_vm5, %v3837_v6, 0  ;;  %v7476_v6 = vsel %vm333_vm5, %v7302_v34, 0 }
 0x3f5   : > { %5289 = vmatpush3.bf16.xpose.msra.mxu1 %v7322_v56 }
 0x3f6   : > { %6011 = vmatprep.subr.msk.bf16.mxu1 %vm333_vm5, %v7324_v2 }
 0x3fd   : > { %5291 = vmatpush3.bf16.xpose.msra.mxu1 %v7330_v58 }
 0x3fe   : > { %6012 = vmatprep.subr.msk.bf16.mxu1 %vm333_vm5, %v7332_v8 }
 0x405   : > { %5293 = vmatpush3.bf16.xpose.msra.mxu1 %v7338_v43 }
 0x406   : > { %6013 = vmatprep.subr.msk.bf16.mxu1 %vm333_vm5, %v7340_v27 }
 0x40d   : > { %5295 = vmatpush3.bf16.xpose.msra.mxu1 %v7346_v15 }
 0x40e   : > { %6014 = vmatprep.subr.msk.bf16.mxu1 %vm333_vm5, %v7348_v21 }
 0x415   : > { %5297 = vmatpush3.bf16.xpose.msra.mxu1 %v7354_v62 }
 0x416   : > { %6015 = vmatprep.subr.msk.bf16.mxu1 %vm333_vm5, %v7356_v10 }
 0x41d   : > { %5299 = vmatpush3.bf16.xpose.msra.mxu1 %v7362_v54 }
 0x41e   : > { %6016 = vmatprep.subr.msk.bf16.mxu1 %vm333_vm5, %v7364_v31 }
 0x425   : > { %5301 = vmatpush3.bf16.xpose.msra.mxu1 %v7370_v9 }
 0x426   : > { %6017 = vmatprep.subr.msk.bf16.mxu1 %vm333_vm5, %v7372_v49 }
 0x42c   : > { %5303 = vmatmul.mubr.msk.bf16.vlgmr.msra.gmra.mrb[4].mxu1 %vm333_vm5, %v7311_v57  ;;  %v3803_v57 = vld [vmem:[#allocation3 + $0x32] sm:$0xff] }
 0x42d   : > { %5305 = vmatpush3.bf16.xpose.msra.mxu1 %v3853_v26  ;;  %5320 = vmatprep.mubr.msk.bf16.mxu1 %vm333_vm5, %v7381_v19  ;;  %v3835_v13 = vpack.c.bf16 %v3804_v1, %v3803_v57  ;;  %v3838_v26 = vpack.c.bf16 %v3810_v53, %v3809_v36  ;;  %v3812_v57 = vld [vmem:[#allocation3 + $0x9a] sm:$0xff] }
 0x42e   : > { %6018 = vmatprep.subr.msk.bf16.mxu1 %vm333_vm5, %v7385_v23  ;;  %v3839_v1 = vpack.c.bf16 %v3812_v57, %v3811_v59  ;;  %v7576_v59 = vld [vmem:[%s7641_s4 + $0xe] sm:$0x3]  ;;  %v4538_v57 = vld [vmem:[#allocation3 + $0x109] sm:$0xff] }
 0x42f   : > { %v7400_v46 = vsel %vm333_vm5, %v3835_v13, 0  ;;  %v7424_v60 = vsel %vm333_vm5, %v3838_v26, 0  ;;  %v3829_v13 = vld [vmem:[#allocation3 + $0x16a] sm:$0xff] }
 0x430   : > { %v7432_v30 = vsel %vm333_vm5, %v3839_v1, 0  ;;  %v7434_v40 = vpack.c.bf16 %v3830_v29, %v3829_v13  ;;  %v4563_v13 = vpack.c.bf16 %v4539_v11, %v4538_v57  ;;  %v4522_v29 = vld [vmem:[#allocation3 + $0x49] sm:$0xff]  ;;  %v4535_v11 = vld [vmem:[#allocation3 + $0xe1] sm:$0xff]  ;;  %v4534_v57 = vld [vmem:[#allocation3 + $0xd9] sm:$0xff] }
 0x435   : > { %5307 = vmatpush3.bf16.xpose.msra.mxu1 %v7392_v38 }
 0x436   : > { %6019 = vmatprep.subr.msk.bf16.mxu1 %vm333_vm5, %v7394_v48 }
 0x43d   : > { %5309 = vmatpush3.bf16.xpose.msra.mxu1 %v7400_v46 }
 0x43e   : > { %6020 = vmatprep.subr.msk.bf16.mxu1 %vm333_vm5, %v7402_v61 }
 0x445   : > { %5311 = vmatpush3.bf16.xpose.msra.mxu1 %v7408_v14 }
 0x446   : > { %6021 = vmatprep.subr.msk.bf16.mxu1 %vm333_vm5, %v7410_v42 }
 0x44d   : > { %5313 = vmatpush3.bf16.xpose.msra.mxu1 %v7416_v41 }
 0x44e   : > { %6022 = vmatprep.subr.msk.bf16.mxu1 %vm333_vm5, %v7418_v25 }
 0x455   : > { %5315 = vmatpush3.bf16.xpose.msra.mxu1 %v7424_v60 }
 0x456   : > { %6023 = vmatprep.subr.msk.bf16.mxu1 %vm333_vm5, %v7426_v7 }
 0x45d   : > { %5317 = vmatpush3.bf16.xpose.msra.mxu1 %v7432_v30 }
 0x45e   : > { %6024 = vmatprep.subr.msk.bf16.mxu1 %vm333_vm5, %v7434_v40 }
 0x465   : > { %5319 = vmatpush3.bf16.xpose.msra.mxu1 %v7440_v17 }
 0x466   : > { %6025 = vmatprep.subr.msk.bf16.mxu1 %vm333_vm5, %v7315_v18 }
 0x46c   : > { %5321 = vmatmul.mubr.msk.bf16.vlgmr.msra.gmra.mrb[8].mxu1 %vm333_vm5, %v7381_v19  ;;  %v3973_v19 = vld [vmem:[#allocation3 + $0x180] sm:$0xff] }
 0x46d   : > { %5323 = vmatpush3.bf16.xpose.msra.mxu1 %v7322_v56  ;;  %5338 = vmatprep.mubr.msk.bf16.mxu1 %vm333_vm5, %v5098_v50  ;;  %v3974_v56 = vld [vmem:[#allocation3 + $0x188] sm:$0xff] }
 0x46e   : > { %6026 = vmatprep.subr.msk.bf16.mxu1 %vm333_vm5, %v7324_v2  ;;  %v7469_v47 = vpack.c.bf16 %v3974_v56, %v3973_v19  ;;  %v4564_v56 = vpack.c.bf16 %v4541_v28, %v4540_v3  ;;  %v4525_v19 = vld [vmem:[#allocation3 + $0x69] sm:$0xff]  ;;  %v6223_v28 = vmov 0  }
 0x46f   : > { %6084 = vset.pattern.permute.xlu0 %v6223_v28 }
 0x475   : > { %5325 = vmatpush3.bf16.xpose.msra.mxu1 %v7330_v58 }
 0x476   : > { %6027 = vmatprep.subr.msk.bf16.mxu1 %vm333_vm5, %v7332_v8 }
 0x47d   : > { %5327 = vmatpush3.bf16.xpose.msra.mxu1 %v7338_v43 }
 0x47e   : > { %6028 = vmatprep.subr.msk.bf16.mxu1 %vm333_vm5, %v7340_v27 }
 0x485   : > { %5329 = vmatpush3.bf16.xpose.msra.mxu1 %v7346_v15 }
 0x486   : > { %6029 = vmatprep.subr.msk.bf16.mxu1 %vm333_vm5, %v7348_v21 }
 0x48d   : > { %5331 = vmatpush3.bf16.xpose.msra.mxu1 %v7354_v62 }
 0x48e   : > { %6030 = vmatprep.subr.msk.bf16.mxu1 %vm333_vm5, %v7356_v10 }
 0x495   : > { %5333 = vmatpush3.bf16.xpose.msra.mxu1 %v7362_v54 }
 0x496   : > { %6031 = vmatprep.subr.msk.bf16.mxu1 %vm333_vm5, %v7364_v31 }
 0x49d   : > { %5335 = vmatpush3.bf16.xpose.msra.mxu1 %v7370_v9 }
 0x49e   : > { %6032 = vmatprep.subr.msk.bf16.mxu1 %vm333_vm5, %v7469_v47 }
 0x4a5   : > { %5337 = vmatpush3.bf16.xpose.msra.mxu1 %v7476_v6 }
 0x4a6   : > { %6033 = vmatprep.subr.msk.bf16.mxu1 %vm333_vm5, %v7231_v22 }
 0x4ac   : > { %5339 = vmatmul.mubr.msk.bf16.vlgmr.msra.gmra.mrb[12].mxu1 %vm333_vm5, %v5098_v50 }
 0x4ad   : > { %5341 = vmatpush3.bf16.xpose.msra.mxu1 %v7236_v33  ;;  %5356 = vmatprep.mubr.msk.bf16.mxu1 %vm333_vm5, %v5100_v24  ;;  %v4118_v33 = vld [vmem:[#allocation3 + $0x189] sm:$0xff] }
 0x4ae   : > { %6034 = vmatprep.subr.msk.bf16.mxu1 %vm333_vm5, %v7238_v63  ;;  %v4117_v63 = vld [vmem:[#allocation3 + $0x181] sm:$0xff] }
 0x4b5   : > { %5343 = vmatpush3.bf16.xpose.msra.mxu1 %v7252_v51  ;;  %v7504_v51 = vpack.c.bf16 %v4118_v33, %v4117_v63  ;;  %v4526_v63 = vld [vmem:[#allocation3 + $0x79] sm:$0xff] }
 0x4b6   : > { %6035 = vmatprep.subr.msk.bf16.mxu1 %vm333_vm5, %v7254_v55  ;;  %v4162_v55 = vsel %vm333_vm5, %v7216_v5, 0 }
 0x4bd   : > { %5345 = vmatpush3.bf16.xpose.msra.mxu1 %v7268_v20  ;;  %v5102_v20 = vld [vmem:[%s7641_s4 + $0xa] sm:$0x3] }
 0x4be   : > { %6036 = vmatprep.subr.msk.bf16.mxu1 %vm333_vm5, %v7270_v52 }
 0x4bf   : > { %v3700_v22 = vpop.f32.mrb[0].mxu1 }
 0x4c0   : > { %v3702_v34 = vpop.f32.mrb[1].mxu1 }
 0x4c1   : > { %v3704_v39 = vpop.f32.mrb[2].mxu1 }
 0x4c2   : > { %v3705_v36 = vpop.f32.mrb[3].mxu1 }
 0x4c3   : > { %v4527_v36 = vld [vmem:[#allocation3 + $0x81] sm:$0xff] }
 0x4c5   : > { %5347 = vmatpush3.bf16.xpose.msra.mxu1 %v7276_v45 }
 0x4c6   : > { %6037 = vmatprep.subr.msk.bf16.mxu1 %vm333_vm5, %v7278_v0 }
 0x4cd   : > { %5349 = vmatpush3.bf16.xpose.msra.mxu1 %v7284_v37 }
 0x4ce   : > { %6038 = vmatprep.subr.msk.bf16.mxu1 %vm333_vm5, %v7286_v44 }
 0x4d5   : > { %5351 = vmatpush3.bf16.xpose.msra.mxu1 %v7292_v12  ;;  %v4261_v12 = vld [vmem:[#allocation3 + $0x182] sm:$0xff] }
 0x4d6   : > { %6039 = vmatprep.subr.msk.bf16.mxu1 %vm333_vm5, %v7294_v16  ;;  %v4262_v16 = vld [vmem:[#allocation3 + $0x18a] sm:$0xff] }
 0x4dd   : > { %5353 = vmatpush3.bf16.xpose.msra.mxu1 %v7300_v35  ;;  %v7536_v35 = vpack.c.bf16 %v4262_v16, %v4261_v12 }
 0x4de   : > { %6040 = vmatprep.subr.msk.bf16.mxu1 %vm333_vm5, %v7504_v51 }
 0x4e5   : > { %5355 = vmatpush3.bf16.xpose.msra.mxu1 %v4162_v55 }
 0x4e6   : > { %6041 = vmatprep.subr.msk.bf16.mxu1 %vm333_vm5, %v7385_v23  ;;  %v4306_v23 = vsel %vm333_vm5, %v7372_v49, 0 }
 0x4ec   : > { %5357 = vmatmul.mubr.msk.bf16.vlgmr.msra.gmra.mrb[16].mxu1 %vm333_vm5, %v5100_v24  ;;  %v4543_v24 = vld [vmem:[#allocation3 + $0x141] sm:$0xff] }
 0x4ed   : > { %5359 = vmatpush3.bf16.xpose.msra.mxu1 %v7392_v38  ;;  %5374 = vmatprep.mubr.msk.bf16.mxu1 %vm333_vm5, %v5102_v20  ;;  %v5104_v38 = vld [vmem:[%s7641_s4 + $0xc] sm:$0x3] }
 0x4ee   : > { %6042 = vmatprep.subr.msk.bf16.mxu1 %vm333_vm5, %v7394_v48 }
 0x4f5   : > { %5361 = vmatpush3.bf16.xpose.msra.mxu1 %v7400_v46 }
 0x4f6   : > { %6043 = vmatprep.subr.msk.bf16.mxu1 %vm333_vm5, %v7402_v61 }
 0x4fd   : > { %5363 = vmatpush3.bf16.xpose.msra.mxu1 %v7408_v14 }
 0x4fe   : > { %6044 = vmatprep.subr.msk.bf16.mxu1 %vm333_vm5, %v7410_v42 }
 0x4ff   : > { %v3792_v5 = vpop.f32.mrb[4].mxu1 }
 0x500   : > { %v3793_v52 = vadd.f32 %v3792_v5, %v3700_v22  ;;  %v3794_v45 = vpop.f32.mrb[5].mxu1  ;;  %v4542_v22 = vld [vmem:[#allocation3 + $0x139] sm:$0xff]  ;;  %v4557_v5 = vpack.c.bf16 %v4527_v36, %v4526_v63 }
 0x501   : > { %v3795_v0 = vadd.f32 %v3794_v45, %v3702_v34  ;;  %v3796_v37 = vpop.f32.mrb[6].mxu1  ;;  %v4565_v39 = vpack.c.bf16 %v4543_v24, %v4542_v22 }
 0x502   : > { %v3797_v44 = vpop.f32.mrb[7].mxu1  ;;  %v4583_v12 = vsel %vm333_vm5, %v4557_v5, 0 }
 0x503   : > { %v4544_v44 = vld [vmem:[#allocation3 + $0x151] sm:$0xff] }
 0x505   : > { %5365 = vmatpush3.bf16.xpose.msra.mxu1 %v7416_v41 }
 0x506   : > { %6045 = vmatprep.subr.msk.bf16.mxu1 %vm333_vm5, %v7418_v25 }
 0x50d   : > { %5367 = vmatpush3.bf16.xpose.msra.mxu1 %v7424_v60 }
 0x50e   : > { %6046 = vmatprep.subr.msk.bf16.mxu1 %vm333_vm5, %v7426_v7 }
 0x515   : > { %5369 = vmatpush3.bf16.xpose.msra.mxu1 %v7432_v30 }
 0x516   : > { %6047 = vmatprep.subr.msk.bf16.mxu1 %vm333_vm5, %v7434_v40 }
 0x51d   : > { %5371 = vmatpush3.bf16.xpose.msra.mxu1 %v7440_v17 }
 0x51e   : > { %6048 = vmatprep.subr.msk.bf16.mxu1 %vm333_vm5, %v7536_v35 }
 0x525   : > { %5373 = vmatpush3.bf16.xpose.msra.mxu1 %v4306_v23  ;;  %v4529_v23 = vld [vmem:[#allocation3 + $0x99] sm:$0xff] }
 0x526   : > { %6049 = vmatprep.subr.msk.bf16.mxu1 %vm333_vm5, %v7324_v2 }
 0x52c   : > { %5375 = vmatmul.mubr.msk.bf16.vlgmr.msra.gmra.mrb[20].mxu1 %vm333_vm5, %v5102_v20 }
 0x52d   : > { %5377 = vmatpush3.bf16.xpose.msra.mxu1 %v7330_v58  ;;  %5392 = vmatprep.mubr.msk.bf16.mxu1 %vm333_vm5, %v5104_v38 }
 0x52e   : > { %6050 = vmatprep.subr.msk.bf16.mxu1 %vm333_vm5, %v7332_v8  ;;  %v4406_v8 = vld [vmem:[#allocation3 + $0x198] sm:$0xff] }
 0x535   : > { %5379 = vmatpush3.bf16.xpose.msra.mxu1 %v7338_v43  ;;  %v4407_v43 = vld [vmem:[#allocation3 + $0x1a0] sm:$0xff] }
 0x536   : > { %6051 = vmatprep.subr.msk.bf16.mxu1 %vm333_vm5, %v7340_v27  ;;  %v4425_v27 = vpack.c.bf16 %v4407_v43, %v4406_v8  ;;  %v4530_v8 = vld [vmem:[#allocation3 + $0xa9] sm:$0xff] }
 0x53d   : > { %5381 = vmatpush3.bf16.xpose.msra.mxu1 %v7346_v15  ;;  %v4537_v15 = vld [vmem:[#allocation3 + $0xf9] sm:$0xff] }
 0x53e   : > { %6052 = vmatprep.subr.msk.bf16.mxu1 %vm333_vm5, %v7348_v21  ;;  %v4536_v21 = vld [vmem:[#allocation3 + $0xf1] sm:$0xff] }
 0x53f   : > { %v3934_v2 = vpop.f32.mrb[8].mxu1 }
 0x540   : > { %v3941_v49 = vadd.f32 %v3934_v2, %v3793_v52  ;;  %v3936_v53 = vpop.f32.mrb[9].mxu1 }
 0x541   : > { %v3942_v26 = vadd.f32 %v3936_v53, %v3795_v0  ;;  %v3938_v58 = vpop.f32.mrb[10].mxu1  ;;  %v4545_v0 = vld [vmem:[#allocation3 + $0x159] sm:$0xff]  ;;  %v4547_v53 = vld [vmem:[#allocation3 + $0x171] sm:$0xff] }
 0x542   : > { %v3939_v4 = vpop.f32.mrb[11].mxu1  ;;  %v4566_v16 = vpack.c.bf16 %v4545_v0, %v4544_v44  ;;  %v4546_v58 = vld [vmem:[#allocation3 + $0x169] sm:$0xff] }
 0x543   : > { %v4567_v4 = vpack.c.bf16 %v4547_v53, %v4546_v58 }
 0x545   : > { %5383 = vmatpush3.bf16.xpose.msra.mxu1 %v7354_v62  ;;  %v4451_v62 = vsel %vm333_vm5, %v7315_v18, 0  ;;  %v4523_v18 = vld [vmem:[#allocation3 + $0x51] sm:$0xff] }
 0x546   : > { %6053 = vmatprep.subr.msk.bf16.mxu1 %vm333_vm5, %v7356_v10  ;;  %v4562_v10 = vpack.c.bf16 %v4537_v15, %v4536_v21  ;;  %v4555_v32 = vpack.c.bf16 %v4523_v18, %v4522_v29  ;;  %v4533_v15 = vld [vmem:[#allocation3 + $0xc9] sm:$0xff]  ;;  %v4532_v21 = vld [vmem:[#allocation3 + $0xc1] sm:$0xff] }
 0x548   : > { %v4577_v50 = vsel %vm333_vm5, %v4555_v32, 0  ;;  %v4808_v32 = vld [vmem:[%s7642_s5] sm:$0xf] }
 0x549   : > { %4811 = vperm.xlu0 %6084, %v4808_v32  }
 0x54d   : > { %5385 = vmatpush3.bf16.xpose.msra.mxu1 %v7362_v54  ;;  %v4521_v54 = vld [vmem:[#allocation3 + $0x39] sm:$0xff] }
 0x54e   : > { %6054 = vmatprep.subr.msk.bf16.mxu1 %vm333_vm5, %v7364_v31  ;;  %v4520_v31 = vld [vmem:[#allocation3 + $0x31] sm:$0xff] }
 0x555   : > { %5387 = vmatpush3.bf16.xpose.msra.mxu1 %v7370_v9  ;;  %v4554_v9 = vpack.c.bf16 %v4521_v54, %v4520_v31  ;;  %v4560_v54 = vpack.c.bf16 %v4533_v15, %v4532_v21 }
 0x556   : > { %6055 = vmatprep.subr.msk.bf16.mxu1 %vm333_vm5, %v7469_v47  ;;  %v4524_v47 = vld [vmem:[#allocation3 + $0x61] sm:$0xff] }
 0x557   : > { %v4574_v1 = vsel %vm333_vm5, %v4554_v9, 0  ;;  %v4592_v9 = vsel %vm333_vm5, %v4560_v54, 0 }
 0x55d   : > { %5389 = vmatpush3.bf16.xpose.msra.mxu1 %v7476_v6  ;;  %v4556_v6 = vpack.c.bf16 %v4525_v19, %v4524_v47 }
 0x55e   : > { %6056 = vmatprep.subr.msk.bf16.mxu1 %vm333_vm5, %v4425_v27 }
 0x55f   : > { %v4580_v34 = vsel %vm333_vm5, %v4556_v6, 0 }
 0x565   : > { %5391 = vmatpush3.bf16.xpose.msra.mxu1 %v4451_v62  ;;  %v4550_v62 = vld [vmem:[#allocation3 + $0x199] sm:$0xff] }
 0x566   : > { %6057 = vmatprep.subr.msk.bf16.mxu1 %vm333_vm5, %v4562_v10  ;;  %v4551_v10 = vld [vmem:[#allocation3 + $0x1a1] sm:$0xff] }
 0x567   : > { %v4569_v31 = vpack.c.bf16 %v4551_v10, %v4550_v62 }
 0x56c   : > { %5393 = vmatmul.mubr.msk.bf16.vlgmr.msra.gmra.mrb[24].mxu1 %vm333_vm5, %v5104_v38  ;;  %v4528_v38 = vld [vmem:[#allocation3 + $0x91] sm:$0xff] }
 0x56d   : > { %5395 = vmatpush3.bf16.xpose.msra.mxu1 %v4574_v1  ;;  %5410 = vmatprep.mubr.msk.bf16.mxu1 %vm333_vm5, %v7576_v59  ;;  %v4558_v2 = vpack.c.bf16 %v4529_v23, %v4528_v38  ;;  %v4561_v1 = vpack.c.bf16 %v4535_v11, %v4534_v57 }
 0x56e   : > { %6058 = vmatprep.subr.msk.bf16.mxu1 %vm333_vm5, %v4563_v13 }
 0x56f   : > { %v4595_v13 = vsel %vm333_vm5, %v4561_v1, 0 }
 0x575   : > { %5397 = vmatpush3.bf16.xpose.msra.mxu1 %v4577_v50 }
 0x576   : > { %6059 = vmatprep.subr.msk.bf16.mxu1 %vm333_vm5, %v4564_v56  ;;  %v4679_v56 = vld [vmem:[#allocation3 + $0xe2] sm:$0xff] }
 0x57d   : > { %5399 = vmatpush3.bf16.xpose.msra.mxu1 %v4580_v34 }
 0x57e   : > { %6060 = vmatprep.subr.msk.bf16.mxu1 %vm333_vm5, %v4565_v39 }
 0x57f   : > { %v4078_v33 = vpop.f32.mrb[12].mxu1 }
 0x580   : > { %v4085_v55 = vadd.f32 %v4078_v33, %v3941_v49  ;;  %v4080_v20 = vpop.f32.mrb[13].mxu1  ;;  %v4586_v49 = vsel %vm333_vm5, %v4558_v2, 0 }
 0x581   : > { %v4086_v52 = vadd.f32 %v4080_v20, %v3942_v26  ;;  %v4082_v45 = vpop.f32.mrb[14].mxu1  ;;  %v4531_v26 = vld [vmem:[#allocation3 + $0xb1] sm:$0xff] }
 0x582   : > { %v4083_v37 = vpop.f32.mrb[15].mxu1  ;;  %v4559_v43 = vpack.c.bf16 %v4531_v26, %v4530_v8 }
 0x584   : > { %v4589_v27 = vsel %vm333_vm5, %v4559_v43, 0 }
 0x585   : > { %5401 = vmatpush3.bf16.xpose.msra.mxu1 %v4583_v12 }
 0x586   : > { %6061 = vmatprep.subr.msk.bf16.mxu1 %vm333_vm5, %v4566_v16 }
 0x58d   : > { %5403 = vmatpush3.bf16.xpose.msra.mxu1 %v4586_v49 }
 0x58e   : > { %6062 = vmatprep.subr.msk.bf16.mxu1 %vm333_vm5, %v4567_v4 }
 0x595   : > { %5405 = vmatpush3.bf16.xpose.msra.mxu1 %v4589_v27 }
 0x596   : > { %6063 = vmatprep.subr.msk.bf16.mxu1 %vm333_vm5, %v7504_v51  ;;  %v5108_v51 = vld [vmem:[%s7641_s4 + $0x10] sm:$0x3] }
 0x59d   : > { %5407 = vmatpush3.bf16.xpose.msra.mxu1 %v4592_v9 }
 0x59e   : > { %6064 = vmatprep.subr.msk.bf16.mxu1 %vm333_vm5, %v4569_v31 }
 0x5a5   : > { %5409 = vmatpush3.bf16.xpose.msra.mxu1 %v4595_v13 }
 0x5a6   : > { %6065 = vmatprep.subr.msk.bf16.mxu1 %vm333_vm5, %v7394_v48 }
 0x5ac   : > { %5411 = vmatmul.mubr.msk.bf16.vlgmr.msra.gmra.mrb[28].mxu1 %vm333_vm5, %v7576_v59 }
 0x5ad   : > { %5413 = vmatpush3.bf16.xpose.msra.mxu1 %v7400_v46  ;;  %5428 = vmatprep.mubr.msk.bf16.mxu1 %vm333_vm5, %v5108_v51 }
 0x5ae   : > { %6066 = vmatprep.subr.msk.bf16.mxu1 %vm333_vm5, %v7402_v61 }
 0x5b5   : > { %5415 = vmatpush3.bf16.xpose.msra.mxu1 %v7408_v14  ;;  %v4676_v14 = vld [vmem:[#allocation3 + $0xc2] sm:$0xff] }
 0x5b6   : > { %6067 = vmatprep.subr.msk.bf16.mxu1 %vm333_vm5, %v7410_v42  ;;  %v4677_v42 = vld [vmem:[#allocation3 + $0xca] sm:$0xff] }
 0x5b7   : > { %v4704_v3 = vpack.c.bf16 %v4677_v42, %v4676_v14 }
 0x5bd   : > { %5417 = vmatpush3.bf16.xpose.msra.mxu1 %v7416_v41  ;;  %v4694_v41 = vld [vmem:[#allocation3 + $0x19a] sm:$0xff] }
 0x5be   : > { %6068 = vmatprep.subr.msk.bf16.mxu1 %vm333_vm5, %v7418_v25  ;;  %v4695_v25 = vld [vmem:[#allocation3 + $0x1a2] sm:$0xff] }
 0x5bf   : > { %v4222_v48 = vpop.f32.mrb[16].mxu1  ;;  %v4713_v50 = vpack.c.bf16 %v4695_v25, %v4694_v41 }
 0x5c0   : > { %v4229_v18 = vadd.f32 %v4222_v48, %v4085_v55  ;;  %v4224_v59 = vpop.f32.mrb[17].mxu1 }
 0x5c1   : > { %v4230_v29 = vadd.f32 %v4224_v59, %v4086_v52  ;;  %v4226_v46 = vpop.f32.mrb[18].mxu1 }
 0x5c2   : > { %v4227_v61 = vpop.f32.mrb[19].mxu1 }
 0x5c5   : > { %5419 = vmatpush3.bf16.xpose.msra.mxu1 %v7424_v60  ;;  %v4736_v60 = vsel %vm333_vm5, %v4704_v3, 0 }
 0x5c6   : > { %6069 = vmatprep.subr.msk.bf16.mxu1 %vm333_vm5, %v7426_v7  ;;  %v4678_v7 = vld [vmem:[#allocation3 + $0xda] sm:$0xff] }
 0x5c8   : > { %v4812_v44 = vpop.permute.xlu0 %4811 }
 0x5cd   : > { %5421 = vmatpush3.bf16.xpose.msra.mxu1 %v7432_v30  ;;  %v4705_v30 = vpack.c.bf16 %v4679_v56, %v4678_v7 }
 0x5ce   : > { %6070 = vmatprep.subr.msk.bf16.mxu1 %vm333_vm5, %v7434_v40 }
 0x5cf   : > { %v4739_v40 = vsel %vm333_vm5, %v4705_v30, 0 }
 0x5d5   : > { %5423 = vmatpush3.bf16.xpose.msra.mxu1 %v7440_v17 }
 0x5d6   : > { %6071 = vmatprep.subr.msk.bf16.mxu1 %vm333_vm5, %v7536_v35 }
 0x5dd   : > { %5425 = vmatpush3.bf16.xpose.msra.mxu1 %v4736_v60 }
 0x5de   : > { %6072 = vmatprep.subr.msk.bf16.mxu1 %vm333_vm5, %v4713_v50 }
 0x5e5   : > { %5427 = vmatpush3.bf16.xpose.msra.mxu1 %v4739_v40 }
 0x5ec   : > { %5429 = vmatmul.mubr.msk.bf16.vlgmr.msra.gmra.mrb[32].mxu1 %vm333_vm5, %v5108_v51 }
 0x5ff   : > { %v4366_v17 = vpop.f32.mrb[20].mxu1 }
 0x600   : > { %v4373_v19 = vadd.f32 %v4366_v17, %v4229_v18  ;;  %v4368_v35 = vpop.f32.mrb[21].mxu1 }
 0x601   : > { %v4374_v47 = vadd.f32 %v4368_v35, %v4230_v29  ;;  %v4370_v6 = vpop.f32.mrb[22].mxu1 }
 0x602   : > { %v4371_v24 = vpop.f32.mrb[23].mxu1 }
 0x63f   : > { %v4511_v22 = vpop.f32.mrb[24].mxu1 }
 0x640   : > { %v4518_v34 = vadd.f32 %v4511_v22, %v4373_v19  ;;  %v4513_v39 = vpop.f32.mrb[25].mxu1 }
 0x641   : > { %v4519_v36 = vadd.f32 %v4513_v39, %v4374_v47  ;;  %v4515_v33 = vpop.f32.mrb[26].mxu1 }
 0x642   : > { %v4516_v63 = vpop.f32.mrb[27].mxu1 }
 0x67f   : > { %v4655_v55 = vpop.f32.mrb[28].mxu1 }
 0x680   : > { %v4662_v20 = vadd.f32 %v4655_v55, %v4518_v34  ;;  %v4657_v5 = vpop.f32.mrb[29].mxu1 }
 0x681   : > { %v4663_v52 = vadd.f32 %v4657_v5, %v4519_v36  ;;  %v4659_v45 = vpop.f32.mrb[30].mxu1 }
 0x682   : > { %v4660_v0 = vpop.f32.mrb[31].mxu1 }
 0x6bf   : > { %v4799_v37 = vpop.f32.mrb[32].mxu1 }
 0x6c0   : > { %v4806_v12 = vadd.f32 %v4799_v37, %v4662_v20  ;;  %v4801_v16 = vpop.f32.mrb[33].mxu1 }
 0x6c1   : > { %v4807_v23 = vadd.f32 %v4801_v16, %v4663_v52  ;;  %v4803_v38 = vpop.f32.mrb[34].mxu1 }
 0x6c2   : > { %v4814_v2 = vadd.f32 %v4812_v44, %v4806_v12  ;;  %v4804_v53 = vpop.f32.mrb[35].mxu1 }
 0x6c3   : > { %v4815_v58 = vadd.f32 %v4812_v44, %v4807_v23 }
 0x6c5   : > { %v4818_v49 = vcombine.low %v4814_v2, %v4815_v58 }
 0x6c7   : > { %4820 = vst [vmem:[%s285_s7] sm:$0xff] %v4818_v49 }
 0x6c8 PF: > { %s16_s21 = sadd.s32 1, %s6219_s21  }
 0x6c9   : > { %p13_p4 = scmp.ge.s32.totalorder %s16_s21, 4  }
 0x6cb   :  { %15 = sbr.rel (!%p13_p4) target bundleno = 1 (0x1), region = 102 }

</bundles_post_ra>
